<compile_context>
chip_gen: v5e
topology: v5e:2x2
jax: 0.10.0
libtpu: 0.0.40
codegen_flags: <defaults>
</compile_context>

<pallas_src>
import functools

import jax
import jax.numpy as jnp
from jax.experimental import pallas as pl
from jax.experimental.pallas import tpu as pltpu

# Demo dims consistent with the module (INPUT_DIMS=1000 as in the spec;
# NUM_CLASSES is undefined in the original file, pick a small value).
INPUT_DIMS = 1000
NUM_CLASSES = 16
BATCH = 512
LANE = 128


def _round_up(n: int, m: int) -> int:
    return (n + m - 1) // m * m


def linear_relu_kernel(x_ref, w_ref, b_ref, o_ref):
    # x_ref: [TILE_B, D] f32 (streamed)      w_ref: [D, Cp] bf16 (VMEM-resident)
    # b_ref: [1, Cp] f32 (VMEM-resident)     o_ref: [TILE_B, Cp] bf16 (lane-dense)
    x = x_ref[...].astype(jnp.bfloat16)          # in-kernel cast: no extra HBM pass
    y = jnp.dot(x, w_ref[...], preferred_element_type=jnp.float32)
    y = jnp.maximum(y + b_ref[...], 0.0)         # f32 bias-add + relu (v5e-safe)
    o_ref[...] = y.astype(o_ref.dtype)           # bf16 store: half the writeback


def prepare_params(w_fc2, b_fc2):
    """Host-side, ONCE at parameter-load time: transpose PyTorch [C, D] weight,
    zero-pad only the class dim to 128 lanes (D stays un-padded), cast to bf16."""
    C, D = w_fc2.shape
    Cp = _round_up(C, LANE)
    w_t = jnp.zeros((D, Cp), jnp.bfloat16).at[:, :C].set(
        w_fc2.T.astype(jnp.bfloat16))
    b = jnp.zeros((1, Cp), jnp.float32).at[0, :C].set(b_fc2.astype(jnp.float32))
    return w_t, b, C


@functools.partial(jax.jit, static_argnames=("num_classes", "tile_b"))
def classifier_forward(x, w_t, b, *, num_classes, tile_b):
    """y = relu(x @ W^T + b).  x: [B, D] f32, w_t/b: from prepare_params."""
    B, D = x.shape
    Dw, Cp = w_t.shape
    assert Dw == D, (Dw, D)

    # Only the batch remainder is ever padded (not hit when B % tile_b == 0).
    Bp = _round_up(B, tile_b)
    if Bp != B:
        x = jnp.pad(x, ((0, Bp - B), (0, 0)))

    flops = 2 * Bp * D * Cp
    bytes_accessed = (Bp * D * 4          # f32 activations in
                      + D * Cp * 2        # bf16 resident weight
                      + Cp * 4            # f32 bias
                      + Bp * Cp * 2)      # bf16 out
    out = pl.pallas_call(
        linear_relu_kernel,
        out_shape=jax.ShapeDtypeStruct((Bp, Cp), jnp.bfloat16),
        grid=(Bp // tile_b,),
        in_specs=[
            # Full-D block: block dim == full array dim, so no 128-alignment /
            # padding is required for D=1000.
            pl.BlockSpec((tile_b, D), lambda i: (i, 0)),
            pl.BlockSpec((D, Cp), lambda i: (0, 0)),   # weight: same block -> resident
            pl.BlockSpec((1, Cp), lambda i: (0, 0)),   # bias:   same block -> resident
        ],
        out_specs=pl.BlockSpec((tile_b, Cp), lambda i: (i, 0)),
        compiler_params=pltpu.CompilerParams(
            dimension_semantics=("parallel",),         # 2-TC batch split on v7x
        ),
        cost_estimate=pl.CostEstimate(
            flops=flops, transcendentals=0, bytes_accessed=bytes_accessed),
    )(x, w_t, b)

    # TODO(synk): if a downstream consumer can take the padded (Bp, Cp) bf16 slab
    # (masking padded batch rows), hand it back directly and slice at the true
    # consumption point instead of here.
    return out[:B, :num_classes]


if __name__ == "__main__":
    key = jax.random.PRNGKey(0)
    kx, kw2, kb2 = jax.random.split(key, 3)

    # Deterministic init mimicking nn.Linear uniform(-1/sqrt(fan_in), 1/sqrt(fan_in)).
    bound = 1.0 / jnp.sqrt(jnp.float32(INPUT_DIMS))
    w_fc2 = jax.random.uniform(kw2, (NUM_CLASSES, INPUT_DIMS), jnp.float32, -bound, bound)
    b_fc2 = jax.random.uniform(kb2, (NUM_CLASSES,), jnp.float32, -bound, bound)
    x = jax.random.normal(kx, (BATCH, INPUT_DIMS), jnp.float32)

    # Parameter prep happens once (transpose + class-pad + bf16 cast), not per call.
    w_t, b, n_classes = prepare_params(w_fc2, b_fc2)

    # 2 grid steps: one tile per TensorCore on v7x, large low-overhead tiles on v5e/v6e.
    tile_b = BATCH // 2

    out = classifier_forward(x, w_t, b, num_classes=n_classes, tile_b=tile_b)
    out = jax.block_until_ready(out)

    # Reference in plain JAX with the same bf16-cast inputs (f32 accumulation).
    x_bf = x.astype(jnp.bfloat16).astype(jnp.float32)
    w_bf = w_fc2.astype(jnp.bfloat16).astype(jnp.float32)
    ref = jnp.maximum(x_bf @ w_bf.T + b_fc2, 0.0)

    out_f32 = out.astype(jnp.float32)
    assert out.shape == (BATCH, NUM_CLASSES)
    assert jnp.allclose(out_f32, ref, atol=2e-2, rtol=2e-2), float(
        jnp.max(jnp.abs(out_f32 - ref)))

    print("KERNEL_OK")
</pallas_src>

<mosaic_0001>
module attributes {stable_mosaic.version = 11 : i64} {
  func.func @linear_relu_kernel(%arg0: i32, %arg1: memref<256x1000xf32, #tpu.memory_space<vmem>>, %arg2: memref<1000x128xbf16, #tpu.memory_space<vmem>>, %arg3: memref<1x128xf32, #tpu.memory_space<vmem>>, %arg4: memref<256x128xbf16, #tpu.memory_space<vmem>>) attributes {dimension_semantics = [#tpu.dimension_semantics<parallel>], iteration_bounds = array<i64: 2>, scalar_prefetch = 0 : i64, scratch_operands = 0 : i64, tpu.core_type = #tpu.core_type<tc>, window_params = [{transform_indices = @transform_0, window_bounds = array<i64: 256, 1000>}, {pipeline_mode = #tpu.pipeline_mode<synchronous>, transform_indices = @transform_1, window_bounds = array<i64: 1000, 128>}, {pipeline_mode = #tpu.pipeline_mode<synchronous>, transform_indices = @transform_2, window_bounds = array<i64: 1, 128>}, {transform_indices = @transform_3, window_bounds = array<i64: 256, 128>}]} {
    %c0 = arith.constant 0 : index
    %c0_0 = arith.constant 0 : index
    %0 = vector.load %arg1[%c0, %c0_0] : memref<256x1000xf32, #tpu.memory_space<vmem>>, vector<256x1000xf32>
    %1 = arith.truncf %0 : vector<256x1000xf32> to vector<256x1000xbf16>
    %c0_1 = arith.constant 0 : index
    %c0_2 = arith.constant 0 : index
    %2 = vector.load %arg2[%c0_1, %c0_2] : memref<1000x128xbf16, #tpu.memory_space<vmem>>, vector<1000x128xbf16>
    %cst = arith.constant dense<0.000000e+00> : vector<256x128xf32>
    %3 = tpu.matmul %1, %2, %cst {dimension_numbers = #tpu.dot_dimension_numbers<[1], [0], [0], [1], [0, 0, 1, 1], [], []>} : vector<256x1000xbf16>, vector<1000x128xbf16>, vector<256x128xf32> -> vector<256x128xf32>
    %c0_3 = arith.constant 0 : index
    %c0_4 = arith.constant 0 : index
    %4 = vector.load %arg3[%c0_3, %c0_4] : memref<1x128xf32, #tpu.memory_space<vmem>>, vector<1x128xf32>
    %5 = vector.broadcast %4 : vector<1x128xf32> to vector<256x128xf32>
    %6 = arith.addf %3, %5 : vector<256x128xf32>
    %cst_5 = arith.constant 0.000000e+00 : f32
    %7 = vector.broadcast %cst_5 : f32 to vector<256x128xf32>
    %8 = arith.maximumf %6, %7 : vector<256x128xf32>
    %9 = arith.truncf %8 : vector<256x128xf32> to vector<256x128xbf16>
    %c0_6 = arith.constant 0 : index
    %c0_7 = arith.constant 0 : index
    %10 = vector.load %arg4[%c0_6, %c0_7] : memref<256x128xbf16, #tpu.memory_space<vmem>>, vector<256x128xbf16>
    tpu.vector_store %arg4[%c0_6, %c0_7], %9 {strides = array<i32>} : memref<256x128xbf16, #tpu.memory_space<vmem>>, vector<256x128xbf16>,
    return
  }
  func.func @transform_0(%arg0: i32) -> (i32, i32) {
    %c0_i32 = arith.constant 0 : i32
    %c0_i32_0 = arith.constant 0 : i32
    return %arg0, %c0_i32 : i32, i32
  }
  func.func @transform_1(%arg0: i32) -> (i32, i32) {
    %c0_i32 = arith.constant 0 : i32
    %c0_i32_0 = arith.constant 0 : i32
    %c0_i32_1 = arith.constant 0 : i32
    return %c0_i32, %c0_i32_0 : i32, i32
  }
  func.func @transform_2(%arg0: i32) -> (i32, i32) {
    %c0_i32 = arith.constant 0 : i32
    %c0_i32_0 = arith.constant 0 : i32
    %c0_i32_1 = arith.constant 0 : i32
    return %c0_i32, %c0_i32_0 : i32, i32
  }
  func.func @transform_3(%arg0: i32) -> (i32, i32) {
    %c0_i32 = arith.constant 0 : i32
    %c0_i32_0 = arith.constant 0 : i32
    return %arg0, %c0_i32 : i32, i32
  }
}

</mosaic_0001>

<bundles_post_ra>
// kernel: classifier_forward.1
= control target key start
LH: loop header
LB: loop body
LE: loop exit
PB: predicated region body
PF: predicated region fallthrough
CT: control target
= control target key end

     0   :  { %s2455_s12 = smov 0   ;;  %s3091_s0 = inlined_call_operand.vmem [shape: f32[512,1000], index: 0, kind: input, shape index: {}]   ;;  %s3092_s1 = inlined_call_operand.vmem [shape: bf16[1000,128], index: 1, kind: input, shape index: {}]   ;;  %s3093_s2 = inlined_call_operand.vmem [shape: f32[1,128], index: 2, kind: input, shape index: {}]   ;;  %s3094_s3 = inlined_call_operand.vmem [shape: bf16[512,128], index: 3, kind: output, shape index: {}]  }
   0x1 LB: > { %s1983_s13 = sadd.s32 4294967295, %s2433_s12   ;;  %p1987_p0 = scmp.ge.s32.totalorder %s2433_s12, 1  ;;  %s2433_s12 = sphi %s2455_s12, %s13_s12  }
   0x2   : > { %p139_p1 = scmp.lt.s32.totalorder %s2433_s12, 3 }
   0x4   : > { %p140_p2 = pnand %p1987_p0, %p139_p1 }
   0x5   : > { %s1988_s11 = sshll.u32 (!%p140_p2), %s1983_s13, 5 }
   0x6   : > { %143 = sbr.rel (%p140_p2) target bundleno = 690 (0x2b2), region = 32  ;;  %p165_p3 = scmp.lt.s32.totalorder (!%p140_p2), %s1988_s11, 63 }
   0xb   : > { %v2267_v0 = vld [vmem:[%s3092_s1 + $0x38] sm:$0xff]  ;;  %v2266_v4 = vld [vmem:[%s3092_s1 + $0x30] sm:$0xff]  ;;  %v2265_v8 = vld [vmem:[%s3092_s1 + $0x28] sm:$0xff]  ;;  %s3096_s11 = smov (!%p165_p3, %s1988_s11), 63  ;;  %vm1115_vm0 = vcmask 1043456   ;;  %vm1066_vm1 = vcmask 850944  }
   0xc   : > { %v2275_v1 = vld [vmem:[%s3092_s1 + $0x78] sm:$0xff]  ;;  %1119 = vmatpush.bf16.msra.mxu0 %v2267_v0  ;;  %v2274_v5 = vld [vmem:[%s3092_s1 + $0x70] sm:$0xff]  ;;  %v2273_v9 = vld [vmem:[%s3092_s1 + $0x68] sm:$0xff]  ;;  %s2259_s10 = sshll.u32 %s3096_s11, 6  ;;  %s1992_s26 = sshll.u32 %s3096_s11, 2 }
   0xd   : > { %v2283_v2 = vld [vmem:[%s3092_s1 + $0xb8] sm:$0xff]  ;;  %1208 = vmatpush.bf16.msra.mxu1 %v2275_v1  ;;  %v2282_v6 = vld [vmem:[%s3092_s1 + $0xb0] sm:$0xff]  ;;  %v2281_v10 = vld [vmem:[%s3092_s1 + $0xa8] sm:$0xff]  ;;  %s2550_s13 = scalar_lea.vmem %s3091_s0, %s2259_s10  ;;  %s2986_s29 = scalar_lea.vmem %s3094_s3, %s1992_s26 }
   0xe   : > { %v2291_v3 = vld [vmem:[%s3092_s1 + $0xf8] sm:$0xff]  ;;  %1297 = vmatpush.bf16.msra.mxu2 %v2283_v2  ;;  %v2290_v7 = vld [vmem:[%s3092_s1 + $0xf0] sm:$0xff]  ;;  %v2289_v11 = vld [vmem:[%s3092_s1 + $0xe8] sm:$0xff] }
   0xf   : > { %1386 = vmatpush.bf16.msra.mxu3 %v2291_v3  ;;  %v2264_v12 = vld [vmem:[%s3092_s1 + $0x20] sm:$0xff]  ;;  %v2263_v16 = vld [vmem:[%s3092_s1 + $0x18] sm:$0xff]  ;;  %v2262_v20 = vld [vmem:[%s3092_s1 + $0x10] sm:$0xff] }
  0x10   : > { %1120 = vmatpush.bf16.msra.mxu0 %v2266_v4  ;;  %v2272_v13 = vld [vmem:[%s3092_s1 + $0x60] sm:$0xff]  ;;  %v2271_v17 = vld [vmem:[%s3092_s1 + $0x58] sm:$0xff]  ;;  %v2270_v21 = vld [vmem:[%s3092_s1 + $0x50] sm:$0xff] }
  0x11   : > { %1209 = vmatpush.bf16.msra.mxu1 %v2274_v5  ;;  %v2280_v14 = vld [vmem:[%s3092_s1 + $0xa0] sm:$0xff]  ;;  %v2279_v18 = vld [vmem:[%s3092_s1 + $0x98] sm:$0xff]  ;;  %v2278_v22 = vld [vmem:[%s3092_s1 + $0x90] sm:$0xff] }
  0x12   : > { %1298 = vmatpush.bf16.msra.mxu2 %v2282_v6  ;;  %v2288_v15 = vld [vmem:[%s3092_s1 + $0xe0] sm:$0xff]  ;;  %v2287_v19 = vld [vmem:[%s3092_s1 + $0xd8] sm:$0xff]  ;;  %v2286_v23 = vld [vmem:[%s3092_s1 + $0xd0] sm:$0xff] }
  0x13   : > { %1387 = vmatpush.bf16.msra.mxu3 %v2290_v7  ;;  %v686_v24 = vld [vmem:[%s3092_s1 + $0x1f0] sm:$0xf]  ;;  %v2261_v25 = vld [vmem:[%s3092_s1 + $0x8] sm:$0xff]  ;;  %v2260_v29 = vld [vmem:[%s3092_s1] sm:$0xff] }
  0x14   : > { %1121 = vmatpush.bf16.msra.mxu0 %v2265_v8  ;;  %v2269_v26 = vld [vmem:[%s3092_s1 + $0x48] sm:$0xff]  ;;  %v2268_v30 = vld [vmem:[%s3092_s1 + $0x40] sm:$0xff]  ;;  %v940_v31 = vunpack.c.l.b16 %v686_v24  ;;  %v180_v38 = vld [vmem:[%s2550_s13 + $0x10] sm:$0xff] }
  0x15   : > { %1210 = vmatpush.bf16.msra.mxu1 %v2273_v9  ;;  %v2277_v27 = vld [vmem:[%s3092_s1 + $0x88] sm:$0xff]  ;;  %v2276_v32 = vld [vmem:[%s3092_s1 + $0x80] sm:$0xff]  ;;  %v188_v39 = vld [vmem:[%s2550_s13 + $0x50] sm:$0xff] }
  0x16   : > { %1299 = vmatpush.bf16.msra.mxu2 %v2281_v10  ;;  %v2285_v28 = vld [vmem:[%s3092_s1 + $0xc8] sm:$0xff]  ;;  %v2284_v33 = vld [vmem:[%s3092_s1 + $0xc0] sm:$0xff]  ;;  %v181_v40 = vld [vmem:[%s2550_s13 + $0x18] sm:$0xff]  ;;  %v1003_v44 = vpack.c.b16 %v940_v31, %v940_v31  ;;  %v436_v47 = vpack.c.bf16 %v188_v39, %v180_v38 }
  0x17   : > { %1388 = vmatpush.bf16.msra.mxu3 %v2289_v11  ;;  %v178_v34 = vld [vmem:[%s2550_s13] sm:$0xff]  ;;  %v179_v36 = vld [vmem:[%s2550_s13 + $0x8] sm:$0xff]  ;;  %v189_v41 = vld [vmem:[%s2550_s13 + $0x58] sm:$0xff] }
  0x18   : > { %1122 = vmatpush.bf16.msra.mxu0 %v2264_v12  ;;  %v186_v35 = vld [vmem:[%s2550_s13 + $0x40] sm:$0xff]  ;;  %v187_v37 = vld [vmem:[%s2550_s13 + $0x48] sm:$0xff]  ;;  %v2315_v42 = vld [vmem:[%s3092_s1 + $0x1b8] sm:$0xff]  ;;  %v437_v48 = vpack.c.bf16 %v189_v41, %v181_v40  ;;  %v1117_v50 = vsel %vm1115_vm0, %v1003_v44, 0 }
  0x19   : > { %1211 = vmatpush.bf16.msra.mxu1 %v2272_v13  ;;  %v2299_v43 = vld [vmem:[%s3092_s1 + $0x138] sm:$0xff]  ;;  %v434_v45 = vpack.c.bf16 %v186_v35, %v178_v34  ;;  %v435_v46 = vpack.c.bf16 %v187_v37, %v179_v36  ;;  %v2314_v51 = vld [vmem:[%s3092_s1 + $0x1b0] sm:$0xff]  ;;  %v2321_v54 = vld [vmem:[%s3092_s1 + $0x1e8] sm:$0xff] }
  0x1a   : > { %1300 = vmatpush.bf16.msra.mxu2 %v2280_v14  ;;  %v2307_v49 = vld [vmem:[%s3092_s1 + $0x178] sm:$0xff]  ;;  %v2298_v52 = vld [vmem:[%s3092_s1 + $0x130] sm:$0xff]  ;;  %v194_v55 = vld [vmem:[%s2550_s13 + $0x80] sm:$0xff] }
  0x1b   : > { %1389 = vmatpush.bf16.msra.mxu3 %v2288_v15  ;;  %v2306_v53 = vld [vmem:[%s3092_s1 + $0x170] sm:$0xff]  ;;  %v202_v56 = vld [vmem:[%s2550_s13 + $0xc0] sm:$0xff]  ;;  %v195_v57 = vld [vmem:[%s2550_s13 + $0x88] sm:$0xff] }
  0x1c   : > { %1123 = vmatpush.bf16.msra.mxu0 %v2263_v16  ;;  %v203_v58 = vld [vmem:[%s2550_s13 + $0xc8] sm:$0xff]  ;;  %v196_v59 = vld [vmem:[%s2550_s13 + $0x90] sm:$0xff]  ;;  %v197_v61 = vld [vmem:[%s2550_s13 + $0x98] sm:$0xff]  ;;  %v442_v63 = vpack.c.bf16 %v202_v56, %v194_v55 }
  0x1d   : > { %1212 = vmatpush.bf16.msra.mxu1 %v2271_v17  ;;  %v204_v60 = vld [vmem:[%s2550_s13 + $0xd0] sm:$0xff]  ;;  %v205_v62 = vld [vmem:[%s2550_s13 + $0xd8] sm:$0xff]  ;;  %v443_v0 = vpack.c.bf16 %v203_v58, %v195_v57  ;;  %v210_v3 = vld [vmem:[%s2550_s13 + $0x100] sm:$0xff] }
  0x1e   : > { %1301 = vmatpush.bf16.msra.mxu2 %v2279_v18  ;;  %v444_v1 = vpack.c.bf16 %v204_v60, %v196_v59  ;;  %v445_v2 = vpack.c.bf16 %v205_v62, %v197_v61  ;;  %v218_v4 = vld [vmem:[%s2550_s13 + $0x140] sm:$0xff]  ;;  %v211_v5 = vld [vmem:[%s2550_s13 + $0x108] sm:$0xff]  ;;  %v212_v7 = vld [vmem:[%s2550_s13 + $0x110] sm:$0xff] }
  0x1f   : > { %1390 = vmatpush.bf16.msra.mxu3 %v2287_v19  ;;  %v219_v6 = vld [vmem:[%s2550_s13 + $0x148] sm:$0xff]  ;;  %v220_v8 = vld [vmem:[%s2550_s13 + $0x150] sm:$0xff]  ;;  %v213_v9 = vld [vmem:[%s2550_s13 + $0x118] sm:$0xff]  ;;  %v450_v11 = vpack.c.bf16 %v218_v4, %v210_v3 }
  0x20   : > { %1124 = vmatpush.bf16.msra.mxu0 %v2262_v20  ;;  %v221_v10 = vld [vmem:[%s2550_s13 + $0x158] sm:$0xff]  ;;  %v451_v12 = vpack.c.bf16 %v219_v6, %v211_v5  ;;  %v452_v13 = vpack.c.bf16 %v220_v8, %v212_v7  ;;  %v2313_v15 = vld [vmem:[%s3092_s1 + $0x1a8] sm:$0xff]  ;;  %v2320_v18 = vld [vmem:[%s3092_s1 + $0x1e0] sm:$0xff] }
  0x21   : > { %1213 = vmatpush.bf16.msra.mxu1 %v2270_v21  ;;  %v453_v14 = vpack.c.bf16 %v221_v10, %v213_v9  ;;  %v2297_v16 = vld [vmem:[%s3092_s1 + $0x128] sm:$0xff]  ;;  %v226_v19 = vld [vmem:[%s2550_s13 + $0x180] sm:$0xff]  ;;  %v236_v24 = vld [vmem:[%s2550_s13 + $0x1d0] sm:$0xff] }
  0x22   : > { %1302 = vmatpush.bf16.msra.mxu2 %v2278_v22  ;;  %v2305_v17 = vld [vmem:[%s3092_s1 + $0x168] sm:$0xff]  ;;  %v234_v20 = vld [vmem:[%s2550_s13 + $0x1c0] sm:$0xff]  ;;  %v244_v35 = vld [vmem:[%s2550_s13 + $0x210] sm:$0xff] }
  0x23   : > { %1391 = vmatpush.bf16.msra.mxu3 %v2286_v23  ;;  %v227_v21 = vld [vmem:[%s2550_s13 + $0x188] sm:$0xff]  ;;  %v228_v23 = vld [vmem:[%s2550_s13 + $0x190] sm:$0xff]  ;;  %v242_v31 = vld [vmem:[%s2550_s13 + $0x200] sm:$0xff] }
  0x24   : > { %1125 = vmatpush.bf16.msra.mxu0 %v2261_v25  ;;  %v235_v22 = vld [vmem:[%s2550_s13 + $0x1c8] sm:$0xff]  ;;  %v229_v25 = vld [vmem:[%s2550_s13 + $0x198] sm:$0xff]  ;;  %v252_v36 = vld [vmem:[%s2550_s13 + $0x250] sm:$0xff] }
  0x25   : > { %1214 = vmatpush.bf16.msra.mxu1 %v2269_v26  ;;  %v237_v26 = vld [vmem:[%s2550_s13 + $0x1d8] sm:$0xff]  ;;  %v251_v34 = vld [vmem:[%s2550_s13 + $0x248] sm:$0xff]  ;;  %v468_v41 = vpack.c.bf16 %v252_v36, %v244_v35  ;;  %v2296_v44 = vld [vmem:[%s3092_s1 + $0x120] sm:$0xff] }
  0x26   : > { %1303 = vmatpush.bf16.msra.mxu2 %v2277_v27  ;;  %v458_v27 = vpack.c.bf16 %v234_v20, %v226_v19  ;;  %v245_v37 = vld [vmem:[%s2550_s13 + $0x218] sm:$0xff]  ;;  %v274_v59 = vld [vmem:[%s2550_s13 + $0x300] sm:$0xff]  ;;  %v275_v61 = vld [vmem:[%s2550_s13 + $0x308] sm:$0xff] }
  0x27   : > { %1392 = vmatpush.bf16.msra.mxu3 %v2285_v28  ;;  %v459_v28 = vpack.c.bf16 %v235_v22, %v227_v21  ;;  %v253_v38 = vld [vmem:[%s2550_s13 + $0x258] sm:$0xff]  ;;  %v282_v60 = vld [vmem:[%s2550_s13 + $0x340] sm:$0xff]  ;;  %v283_v62 = vld [vmem:[%s2550_s13 + $0x348] sm:$0xff] }
  0x28   : > { %1126 = vmatpush.bf16.msra.mxu0 %v2260_v29  ;;  %v460_v29 = vpack.c.bf16 %v236_v24, %v228_v23  ;;  %v2319_v58 = vld [vmem:[%s3092_s1 + $0x1d8] sm:$0xff]  ;;  %v482_v3 = vpack.c.bf16 %v282_v60, %v274_v59  ;;  %v483_v4 = vpack.c.bf16 %v283_v62, %v275_v61  ;;  %v290_v10 = vld [vmem:[%s2550_s13 + $0x380] sm:$0xff] }
  0x29   : > { %1215 = vmatpush.bf16.msra.mxu1 %v2268_v30  ;;  %v461_v30 = vpack.c.bf16 %v237_v26, %v229_v25  ;;  %v2311_v7 = vld [vmem:[%s3092_s1 + $0x198] sm:$0xff]  ;;  %v2691_v22 = vld [vmem:[%s3093_s2] ss:$0 sm:$0xff]  ;;  %v2318_v25 = vld [vmem:[%s3092_s1 + $0x1d0] sm:$0xff] }
  0x2a   : > { %1304 = vmatpush.bf16.msra.mxu2 %v2276_v32  ;;  %v250_v32 = vld [vmem:[%s2550_s13 + $0x240] sm:$0xff]  ;;  %v2295_v8 = vld [vmem:[%s3092_s1 + $0x118] sm:$0xff]  ;;  %v307_v26 = vld [vmem:[%s2550_s13 + $0x408] sm:$0xff] }
  0x2b   : > { %1393 = vmatpush.bf16.msra.mxu3 %v2284_v33  ;;  %1127 = vmatmul.bf16.vlgmr.msra.gmra.mxu0 %v434_v45  ;;  %v243_v33 = vld [vmem:[%s2550_s13 + $0x208] sm:$0xff]  ;;  %v466_v39 = vpack.c.bf16 %v250_v32, %v242_v31  ;;  %v2304_v45 = vld [vmem:[%s3092_s1 + $0x160] sm:$0xff]  ;;  %v2303_v9 = vld [vmem:[%s3092_s1 + $0x158] sm:$0xff] }
  0x2c   : > { %1475 = vmatpush.bf16.msrb.mxu0 %v2299_v43  ;;  %1216 = vmatmul.bf16.vlgmr.msra.gmra.mxu1 %v435_v46  ;;  %v467_v40 = vpack.c.bf16 %v251_v34, %v243_v33  ;;  %v2312_v43 = vld [vmem:[%s3092_s1 + $0x1a0] sm:$0xff]  ;;  %v317_v31 = vld [vmem:[%s2550_s13 + $0x458] sm:$0xff] }
  0x2d   : > { %1305 = vmatmul.bf16.vlgmr.msra.gmra.mxu2 %v436_v47  ;;  %1564 = vmatpush.bf16.msrb.mxu1 %v2307_v49  ;;  %v258_v46 = vld [vmem:[%s2550_s13 + $0x280] sm:$0xff]  ;;  %v267_v49 = vld [vmem:[%s2550_s13 + $0x2c8] sm:$0xff] }
  0x2e   : > { %1653 = vmatpush.bf16.msrb.mxu2 %v2315_v42  ;;  %1394 = vmatmul.bf16.vlgmr.msra.gmra.mxu3 %v437_v48  ;;  %v469_v42 = vpack.c.bf16 %v253_v38, %v245_v37  ;;  %v266_v47 = vld [vmem:[%s2550_s13 + $0x2c0] sm:$0xff]  ;;  %v259_v48 = vld [vmem:[%s2550_s13 + $0x288] sm:$0xff] }
  0x2f   : > { %1743 = vmatpush.bf16.msrb.mxu3 %v1117_v50  ;;  %v260_v50 = vld [vmem:[%s2550_s13 + $0x290] sm:$0xff]  ;;  %v475_v55 = vpack.c.bf16 %v267_v49, %v259_v48  ;;  %v306_v23 = vld [vmem:[%s2550_s13 + $0x400] sm:$0xff] }
  0x30   : > { %1476 = vmatpush.bf16.msrb.mxu0 %v2298_v52  ;;  %v261_v52 = vld [vmem:[%s2550_s13 + $0x298] sm:$0xff]  ;;  %v314_v24 = vld [vmem:[%s2550_s13 + $0x440] sm:$0xff]  ;;  %v2302_v49 = vld [vmem:[%s3092_s1 + $0x150] sm:$0xff] }
  0x31   : > { %1565 = vmatpush.bf16.msrb.mxu1 %v2306_v53  ;;  %v269_v53 = vld [vmem:[%s2550_s13 + $0x2d8] sm:$0xff]  ;;  %v498_v32 = vpack.c.bf16 %v314_v24, %v306_v23 }
  0x32   : > { %1654 = vmatpush.bf16.msrb.mxu2 %v2314_v51  ;;  %v268_v51 = vld [vmem:[%s2550_s13 + $0x2d0] sm:$0xff]  ;;  %v477_v57 = vpack.c.bf16 %v269_v53, %v261_v52  ;;  %v330_v52 = vld [vmem:[%s2550_s13 + $0x4c0] sm:$0xff]  ;;  %v323_v53 = vld [vmem:[%s2550_s13 + $0x488] sm:$0xff] }
  0x33   : > { %1744 = vmatpush.bf16.msrb.mxu3 %v2321_v54  ;;  %v474_v54 = vpack.c.bf16 %v266_v47, %v258_v46  ;;  %v476_v56 = vpack.c.bf16 %v268_v51, %v260_v50  ;;  %v322_v51 = vld [vmem:[%s2550_s13 + $0x480] sm:$0xff]  ;;  %v341_v23 = vld [vmem:[%s2550_s13 + $0x518] sm:$0xff] }
  0x34   : > { %1477 = vmatpush.bf16.msrb.mxu0 %v2297_v16  ;;  %v293_v16 = vld [vmem:[%s2550_s13 + $0x398] sm:$0xff]  ;;  %v506_v61 = vpack.c.bf16 %v330_v52, %v322_v51  ;;  %v355_v51 = vld [vmem:[%s2550_s13 + $0x588] sm:$0xff] }
  0x35   : > { %1566 = vmatpush.bf16.msrb.mxu1 %v2305_v17  ;;  %v301_v17 = vld [vmem:[%s2550_s13 + $0x3d8] sm:$0xff]  ;;  %v363_v52 = vld [vmem:[%s2550_s13 + $0x5c8] sm:$0xff] }
  0x36   : > { %1655 = vmatpush.bf16.msrb.mxu2 %v2313_v15  ;;  %v300_v15 = vld [vmem:[%s2550_s13 + $0x3d0] sm:$0xff]  ;;  %v493_v21 = vpack.c.bf16 %v301_v17, %v293_v16  ;;  %v346_v16 = vld [vmem:[%s2550_s13 + $0x540] sm:$0xff]  ;;  %v2317_v17 = vld [vmem:[%s3092_s1 + $0x1c8] sm:$0xff] }
  0x37   : > { %1745 = vmatpush.bf16.msrb.mxu3 %v2320_v18  ;;  %v349_v24 = vld [vmem:[%s2550_s13 + $0x558] sm:$0xff] }
  0x38   : > { %1478 = vmatpush.bf16.msrb.mxu0 %v2296_v44 }
  0x39   : > { %1567 = vmatpush.bf16.msrb.mxu1 %v2304_v45 }
  0x3a   : > { %1656 = vmatpush.bf16.msrb.mxu2 %v2312_v43 }
  0x3b   : > { %1132 = vmatmul.bf16.gmra.mxu0 %v442_v63  ;;  %1746 = vmatpush.bf16.msrb.mxu3 %v2319_v58  ;;  %v276_v63 = vld [vmem:[%s2550_s13 + $0x310] sm:$0xff]  ;;  %v333_v58 = vld [vmem:[%s2550_s13 + $0x4d8] sm:$0xff] }
  0x3c   : > { %1221 = vmatmul.bf16.gmra.mxu1 %v443_v0  ;;  %v284_v0 = vld [vmem:[%s2550_s13 + $0x350] sm:$0xff]  ;;  %1479 = vmatpush.bf16.msrb.mxu0 %v2295_v8 }
  0x3d   : > { %1310 = vmatmul.bf16.gmra.mxu2 %v444_v1  ;;  %v277_v1 = vld [vmem:[%s2550_s13 + $0x318] sm:$0xff]  ;;  %v484_v5 = vpack.c.bf16 %v284_v0, %v276_v63  ;;  %1568 = vmatpush.bf16.msrb.mxu1 %v2303_v9 }
  0x3e   : > { %1399 = vmatmul.bf16.gmra.mxu3 %v445_v2  ;;  %v285_v2 = vld [vmem:[%s2550_s13 + $0x358] sm:$0xff]  ;;  %1657 = vmatpush.bf16.msrb.mxu2 %v2311_v7 }
  0x3f   : > { %v485_v6 = vpack.c.bf16 %v285_v2, %v277_v1  ;;  %1747 = vmatpush.bf16.msrb.mxu3 %v2318_v25 }
  0x41   : > { %1569 = vmatpush.bf16.msrb.mxu1 %v2302_v49  ;;  %v354_v49 = vld [vmem:[%s2550_s13 + $0x580] sm:$0xff] }
  0x43   : > { %1748 = vmatpush.bf16.msrb.mxu3 %v2317_v17  ;;  %v371_v17 = vld [vmem:[%s2550_s13 + $0x608] sm:$0xff] }
  0x4b   : > { %1137 = vmatmul.bf16.gmra.mxu0 %v450_v11  ;;  %v298_v11 = vld [vmem:[%s2550_s13 + $0x3c0] sm:$0xff] }
  0x4c   : > { %1226 = vmatmul.bf16.gmra.mxu1 %v451_v12  ;;  %v291_v12 = vld [vmem:[%s2550_s13 + $0x388] sm:$0xff]  ;;  %v490_v18 = vpack.c.bf16 %v298_v11, %v290_v10 }
  0x4d   : > { %1315 = vmatmul.bf16.gmra.mxu2 %v452_v13  ;;  %v299_v13 = vld [vmem:[%s2550_s13 + $0x3c8] sm:$0xff] }
  0x4e   : > { %1404 = vmatmul.bf16.gmra.mxu3 %v453_v14  ;;  %v292_v14 = vld [vmem:[%s2550_s13 + $0x390] sm:$0xff]  ;;  %v491_v19 = vpack.c.bf16 %v299_v13, %v291_v12 }
  0x4f   : > { %v492_v20 = vpack.c.bf16 %v300_v15, %v292_v14  ;;  %v338_v15 = vld [vmem:[%s2550_s13 + $0x500] sm:$0xff] }
  0x5b   : > { %1142 = vmatmul.bf16.gmra.mxu0 %v458_v27  ;;  %v315_v27 = vld [vmem:[%s2550_s13 + $0x448] sm:$0xff] }
  0x5c   : > { %1231 = vmatmul.bf16.gmra.mxu1 %v459_v28  ;;  %v308_v28 = vld [vmem:[%s2550_s13 + $0x410] sm:$0xff]  ;;  %v499_v33 = vpack.c.bf16 %v315_v27, %v307_v26  ;;  %v514_v27 = vpack.c.bf16 %v346_v16, %v338_v15  ;;  %v370_v15 = vld [vmem:[%s2550_s13 + $0x600] sm:$0xff] }
  0x5d   : > { %1320 = vmatmul.bf16.gmra.mxu2 %v460_v29  ;;  %v316_v29 = vld [vmem:[%s2550_s13 + $0x450] sm:$0xff]  ;;  %v378_v16 = vld [vmem:[%s2550_s13 + $0x640] sm:$0xff] }
  0x5e   : > { %1409 = vmatmul.bf16.gmra.mxu3 %v461_v30  ;;  %v309_v30 = vld [vmem:[%s2550_s13 + $0x418] sm:$0xff]  ;;  %v500_v36 = vpack.c.bf16 %v316_v29, %v308_v28 }
  0x5f   : > { %v501_v37 = vpack.c.bf16 %v317_v31, %v309_v30 }
  0x6b   : > { %1147 = vmatmul.bf16.gmra.mxu0 %v466_v39 }
  0x6c   : > { %1236 = vmatmul.bf16.gmra.mxu1 %v467_v40  ;;  %v2310_v40 = vld [vmem:[%s3092_s1 + $0x190] sm:$0xff] }
  0x6d   : > { %1325 = vmatmul.bf16.gmra.mxu2 %v468_v41  ;;  %v2294_v41 = vld [vmem:[%s3092_s1 + $0x110] sm:$0xff] }
  0x6e   : > { %1414 = vmatmul.bf16.gmra.mxu3 %v469_v42  ;;  %1658 = vmatpush.bf16.msrb.mxu2 %v2310_v40 }
  0x6f   : > { %1480 = vmatpush.bf16.msrb.mxu0 %v2294_v41 }
  0x7b   : > { %1152 = vmatmul.bf16.gmra.mxu0 %v474_v54  ;;  %v331_v54 = vld [vmem:[%s2550_s13 + $0x4c8] sm:$0xff] }
  0x7c   : > { %1241 = vmatmul.bf16.gmra.mxu1 %v475_v55  ;;  %v324_v55 = vld [vmem:[%s2550_s13 + $0x490] sm:$0xff]  ;;  %v507_v62 = vpack.c.bf16 %v331_v54, %v323_v53 }
  0x7d   : > { %1330 = vmatmul.bf16.gmra.mxu2 %v476_v56  ;;  %v332_v56 = vld [vmem:[%s2550_s13 + $0x4d0] sm:$0xff] }
  0x7e   : > { %1419 = vmatmul.bf16.gmra.mxu3 %v477_v57  ;;  %v325_v57 = vld [vmem:[%s2550_s13 + $0x498] sm:$0xff]  ;;  %v508_v2 = vpack.c.bf16 %v332_v56, %v324_v55  ;;  %v356_v53 = vld [vmem:[%s2550_s13 + $0x590] sm:$0xff] }
  0x7f   : > { %v364_v54 = vld [vmem:[%s2550_s13 + $0x5d0] sm:$0xff]  ;;  %v357_v55 = vld [vmem:[%s2550_s13 + $0x598] sm:$0xff] }
  0x80   : > { %v365_v56 = vld [vmem:[%s2550_s13 + $0x5d8] sm:$0xff] }
  0x8b   : > { %1157 = vmatmul.bf16.gmra.mxu0 %v482_v3  ;;  %v509_v3 = vpack.c.bf16 %v333_v58, %v325_v57 }
  0x8c   : > { %1246 = vmatmul.bf16.gmra.mxu1 %v483_v4 }
  0x8d   : > { %1335 = vmatmul.bf16.gmra.mxu2 %v484_v5 }
  0x8e   : > { %1424 = vmatmul.bf16.gmra.mxu3 %v485_v6 }
  0x9b   : > { %1162 = vmatmul.bf16.gmra.mxu0 %v490_v18  ;;  %v339_v18 = vld [vmem:[%s2550_s13 + $0x508] sm:$0xff] }
  0x9c   : > { %1251 = vmatmul.bf16.gmra.mxu1 %v491_v19  ;;  %v347_v19 = vld [vmem:[%s2550_s13 + $0x548] sm:$0xff] }
  0x9d   : > { %1340 = vmatmul.bf16.gmra.mxu2 %v492_v20  ;;  %v340_v20 = vld [vmem:[%s2550_s13 + $0x510] sm:$0xff]  ;;  %v515_v28 = vpack.c.bf16 %v347_v19, %v339_v18  ;;  %v379_v18 = vld [vmem:[%s2550_s13 + $0x648] sm:$0xff] }
  0x9e   : > { %1429 = vmatmul.bf16.gmra.mxu3 %v493_v21  ;;  %v348_v21 = vld [vmem:[%s2550_s13 + $0x550] sm:$0xff] }
  0x9f   : > { %v372_v19 = vld [vmem:[%s2550_s13 + $0x610] sm:$0xff] }
  0xa8   : > { %v1128_v34 = vpop.f32.mrf.mxu0 }
  0xa9   : > { %v1217_v35 = vpop.f32.mrf.mxu1  ;;  %v1129_v38 = vadd.f32 %v2691_v22, %v1128_v34 }
  0xab   : > { %v1218_v39 = vadd.f32 %v1217_v35, %v1129_v38  ;;  %1167 = vmatmul.bf16.gmra.mxu0 %v498_v32  ;;  %v516_v32 = vpack.c.bf16 %v348_v21, %v340_v20  ;;  %v2293_v38 = vld [vmem:[%s3092_s1 + $0x108] sm:$0xff]  ;;  %v380_v20 = vld [vmem:[%s2550_s13 + $0x650] sm:$0xff]  ;;  %v373_v21 = vld [vmem:[%s2550_s13 + $0x618] sm:$0xff] }
  0xac   : > { %1256 = vmatmul.bf16.gmra.mxu1 %v499_v33  ;;  %v517_v33 = vpack.c.bf16 %v349_v24, %v341_v23  ;;  %1481 = vmatpush.bf16.msrb.mxu0 %v2293_v38  ;;  %v381_v23 = vld [vmem:[%s2550_s13 + $0x658] sm:$0xff]  ;;  %v2308_v38 = vld [vmem:[%s3092_s1 + $0x180] sm:$0xff] }
  0xad   : > { %1345 = vmatmul.bf16.gmra.mxu2 %v500_v36 }
  0xae   : > { %1434 = vmatmul.bf16.gmra.mxu3 %v501_v37  ;;  %v2309_v37 = vld [vmem:[%s3092_s1 + $0x188] sm:$0xff] }
  0xaf   : > { %1659 = vmatpush.bf16.msrb.mxu2 %v2309_v37  ;;  %v2316_v37 = vld [vmem:[%s3092_s1 + $0x1c0] sm:$0xff] }
  0xb0   : > { %v1306_v42 = vpop.f32.mrf.mxu2  ;;  %v1130_v45 = vpop.f32.mrf.mxu0  ;;  %1749 = vmatpush.bf16.msrb.mxu3 %v2316_v37 }
  0xb1   : > { %v1395_v43 = vpop.f32.mrf.mxu3  ;;  %v1307_v44 = vadd.f32 %v1306_v42, %v1218_v39  ;;  %v1219_v46 = vpop.f32.mrf.mxu1  ;;  %v1131_v47 = vadd.f32 %v2691_v22, %v1130_v45 }
  0xb3   : > { %v2712_v48 = vadd.f32 %v1395_v43, %v1307_v44  ;;  %v1220_v50 = vadd.f32 %v1219_v46, %v1131_v47  ;;  %v2301_v46 = vld [vmem:[%s3092_s1 + $0x148] sm:$0xff]  ;;  %1660 = vmatpush.bf16.msrb.mxu2 %v2308_v38 }
  0xb4   : > { %1570 = vmatpush.bf16.msrb.mxu1 %v2301_v46 }
  0xb8   : > { %v1308_v59 = vpop.f32.mrf.mxu2  ;;  %v1133_v0 = vpop.f32.mrf.mxu0 }
  0xb9   : > { %v1397_v60 = vpop.f32.mrf.mxu3  ;;  %v1309_v63 = vadd.f32 %v1308_v59, %v1220_v50  ;;  %v1222_v1 = vpop.f32.mrf.mxu1  ;;  %v1134_v4 = vadd.f32 %v2691_v22, %v1133_v0  ;;  %v362_v50 = vld [vmem:[%s2550_s13 + $0x5c0] sm:$0xff]  ;;  %v524_v0 = vpack.c.bf16 %v364_v54, %v356_v53  ;;  %v387_v53 = vld [vmem:[%s2550_s13 + $0x688] sm:$0xff] }
  0xba   : > { %v522_v59 = vpack.c.bf16 %v362_v50, %v354_v49  ;;  %v2300_v49 = vld [vmem:[%s3092_s1 + $0x140] sm:$0xff]  ;;  %v395_v54 = vld [vmem:[%s2550_s13 + $0x6c8] sm:$0xff] }
  0xbb   : > { %v2726_v5 = vadd.f32 %v1397_v60, %v1309_v63  ;;  %v1223_v6 = vadd.f32 %v1222_v1, %v1134_v4  ;;  %1172 = vmatmul.bf16.gmra.mxu0 %v506_v61  ;;  %v523_v60 = vpack.c.bf16 %v363_v52, %v355_v51  ;;  %v525_v1 = vpack.c.bf16 %v365_v56, %v357_v55  ;;  %v386_v51 = vld [vmem:[%s2550_s13 + $0x680] sm:$0xff]  ;;  %v388_v55 = vld [vmem:[%s2550_s13 + $0x690] sm:$0xff] }
  0xbc   : > { %1261 = vmatmul.bf16.gmra.mxu1 %v507_v62  ;;  %v394_v52 = vld [vmem:[%s2550_s13 + $0x6c0] sm:$0xff]  ;;  %v396_v56 = vld [vmem:[%s2550_s13 + $0x6d0] sm:$0xff] }
  0xbd   : > { %1350 = vmatmul.bf16.gmra.mxu2 %v508_v2  ;;  %1571 = vmatpush.bf16.msrb.mxu1 %v2300_v49 }
  0xbe   : > { %1439 = vmatmul.bf16.gmra.mxu3 %v509_v3 }
  0xc0   : > { %v1311_v7 = vpop.f32.mrf.mxu2  ;;  %v1135_v10 = vpop.f32.mrf.mxu0 }
  0xc1   : > { %v1400_v8 = vpop.f32.mrf.mxu3  ;;  %v1312_v9 = vadd.f32 %v1311_v7, %v1223_v6  ;;  %v1224_v11 = vpop.f32.mrf.mxu1  ;;  %v1136_v12 = vadd.f32 %v2691_v22, %v1135_v10 }
  0xc3   : > { %v2729_v13 = vadd.f32 %v1400_v8, %v1312_v9  ;;  %v1225_v14 = vadd.f32 %v1224_v11, %v1136_v12 }
  0xc8   : > { %v1313_v25 = vpop.f32.mrf.mxu2  ;;  %v1138_v30 = vpop.f32.mrf.mxu0 }
  0xc9   : > { %v1402_v26 = vpop.f32.mrf.mxu3  ;;  %v1314_v29 = vadd.f32 %v1313_v25, %v1225_v14  ;;  %v1227_v31 = vpop.f32.mrf.mxu1  ;;  %v1139_v34 = vadd.f32 %v2691_v22, %v1138_v30 }
  0xcb   : > { %v2743_v35 = vadd.f32 %v1402_v26, %v1314_v29  ;;  %v1228_v36 = vadd.f32 %v1227_v31, %v1139_v34  ;;  %1177 = vmatmul.bf16.gmra.mxu0 %v514_v27  ;;  %v530_v26 = vpack.c.bf16 %v378_v16, %v370_v15  ;;  %v531_v27 = vpack.c.bf16 %v379_v18, %v371_v17 }
  0xcc   : > { %1266 = vmatmul.bf16.gmra.mxu1 %v515_v28  ;;  %v532_v31 = vpack.c.bf16 %v380_v20, %v372_v19  ;;  %v402_v19 = vld [vmem:[%s2550_s13 + $0x700] sm:$0xff] }
  0xcd   : > { %1355 = vmatmul.bf16.gmra.mxu2 %v516_v32  ;;  %v533_v32 = vpack.c.bf16 %v381_v23, %v373_v21  ;;  %v410_v20 = vld [vmem:[%s2550_s13 + $0x740] sm:$0xff]  ;;  %v403_v21 = vld [vmem:[%s2550_s13 + $0x708] sm:$0xff] }
  0xce   : > { %1444 = vmatmul.bf16.gmra.mxu3 %v517_v33  ;;  %v411_v23 = vld [vmem:[%s2550_s13 + $0x748] sm:$0xff] }
  0xd0   : > { %v1316_v39 = vpop.f32.mrf.mxu2  ;;  %v1140_v42 = vpop.f32.mrf.mxu0 }
  0xd1   : > { %v1405_v40 = vpop.f32.mrf.mxu3  ;;  %v1317_v41 = vadd.f32 %v1316_v39, %v1228_v36  ;;  %v1229_v43 = vpop.f32.mrf.mxu1  ;;  %v1141_v44 = vadd.f32 %v2691_v22, %v1140_v42  ;;  %v2292_v39 = vld [vmem:[%s3092_s1 + $0x100] sm:$0xff] }
  0xd2   : > { %1482 = vmatpush.bf16.msrb.mxu0 %v2292_v39 }
  0xd3   : > { %v2752_v45 = vadd.f32 %v1405_v40, %v1317_v41  ;;  %v1230_v47 = vadd.f32 %v1229_v43, %v1141_v44 }
  0xd8   : > { %v1318_v57 = vpop.f32.mrf.mxu2  ;;  %v1143_v62 = vpop.f32.mrf.mxu0 }
  0xd9   : > { %v1407_v58 = vpop.f32.mrf.mxu3  ;;  %v1319_v61 = vadd.f32 %v1318_v57, %v1230_v47  ;;  %v1232_v63 = vpop.f32.mrf.mxu1  ;;  %v1144_v2 = vadd.f32 %v2691_v22, %v1143_v62  ;;  %v389_v57 = vld [vmem:[%s2550_s13 + $0x698] sm:$0xff]  ;;  %v539_v62 = vpack.c.bf16 %v395_v54, %v387_v53  ;;  %v418_v53 = vld [vmem:[%s2550_s13 + $0x780] sm:$0xff] }
  0xda   : > { %v426_v54 = vld [vmem:[%s2550_s13 + $0x7c0] sm:$0xff] }
  0xdb   : > { %v2766_v3 = vadd.f32 %v1407_v58, %v1319_v61  ;;  %v1233_v4 = vadd.f32 %v1232_v63, %v1144_v2  ;;  %1182 = vmatmul.bf16.gmra.mxu0 %v522_v59  ;;  %v397_v58 = vld [vmem:[%s2550_s13 + $0x6d8] sm:$0xff]  ;;  %v538_v61 = vpack.c.bf16 %v394_v52, %v386_v51  ;;  %v540_v2 = vpack.c.bf16 %v396_v56, %v388_v55  ;;  %v419_v55 = vld [vmem:[%s2550_s13 + $0x788] sm:$0xff] }
  0xdc   : > { %1271 = vmatmul.bf16.gmra.mxu1 %v523_v60  ;;  %v427_v56 = vld [vmem:[%s2550_s13 + $0x7c8] sm:$0xff] }
  0xdd   : > { %1360 = vmatmul.bf16.gmra.mxu2 %v524_v0 }
  0xde   : > { %1449 = vmatmul.bf16.gmra.mxu3 %v525_v1 }
  0xe0   : > { %v1321_v6 = vpop.f32.mrf.mxu2  ;;  %v1145_v9 = vpop.f32.mrf.mxu0 }
  0xe1   : > { %v1410_v7 = vpop.f32.mrf.mxu3  ;;  %v1322_v8 = vadd.f32 %v1321_v6, %v1233_v4  ;;  %v1234_v10 = vpop.f32.mrf.mxu1  ;;  %v1146_v11 = vadd.f32 %v2691_v22, %v1145_v9  ;;  %v541_v4 = vpack.c.bf16 %v397_v58, %v389_v57  ;;  %v420_v57 = vld [vmem:[%s2550_s13 + $0x790] sm:$0xff] }
  0xe2   : > { %v428_v58 = vld [vmem:[%s2550_s13 + $0x7d0] sm:$0xff] }
  0xe3   : > { %v2769_v12 = vadd.f32 %v1410_v7, %v1322_v8  ;;  %v1235_v14 = vadd.f32 %v1234_v10, %v1146_v11 }
  0xe8   : > { %v1323_v24 = vpop.f32.mrf.mxu2  ;;  %v1148_v29 = vpop.f32.mrf.mxu0 }
  0xe9   : > { %v1412_v25 = vpop.f32.mrf.mxu3  ;;  %v1324_v28 = vadd.f32 %v1323_v24, %v1235_v14  ;;  %v1237_v30 = vpop.f32.mrf.mxu1  ;;  %v1149_v33 = vadd.f32 %v2691_v22, %v1148_v29  ;;  %v404_v24 = vld [vmem:[%s2550_s13 + $0x710] sm:$0xff] }
  0xeb   : > { %v2780_v34 = vadd.f32 %v1412_v25, %v1324_v28  ;;  %v1238_v36 = vadd.f32 %v1237_v30, %v1149_v33  ;;  %1187 = vmatmul.bf16.gmra.mxu0 %v530_v26  ;;  %v412_v25 = vld [vmem:[%s2550_s13 + $0x750] sm:$0xff]  ;;  %v405_v26 = vld [vmem:[%s2550_s13 + $0x718] sm:$0xff]  ;;  %v546_v30 = vpack.c.bf16 %v410_v20, %v402_v19 }
  0xec   : > { %1276 = vmatmul.bf16.gmra.mxu1 %v531_v27  ;;  %v413_v27 = vld [vmem:[%s2550_s13 + $0x758] sm:$0xff]  ;;  %v548_v37 = vpack.c.bf16 %v412_v25, %v404_v24  ;;  %v182_v24 = vld [vmem:[%s2550_s13 + $0x20] sm:$0xff] }
  0xed   : > { %1365 = vmatmul.bf16.gmra.mxu2 %v532_v31  ;;  %v547_v31 = vpack.c.bf16 %v411_v23, %v403_v21  ;;  %v549_v38 = vpack.c.bf16 %v413_v27, %v405_v26  ;;  %v190_v25 = vld [vmem:[%s2550_s13 + $0x60] sm:$0xff]  ;;  %v183_v26 = vld [vmem:[%s2550_s13 + $0x28] sm:$0xff] }
  0xee   : > { %1454 = vmatmul.bf16.gmra.mxu3 %v533_v32  ;;  %v191_v27 = vld [vmem:[%s2550_s13 + $0x68] sm:$0xff] }
  0xf0   : > { %v1326_v40 = vpop.f32.mrf.mxu2  ;;  %v1150_v43 = vpop.f32.mrf.mxu0 }
  0xf1   : > { %v1415_v41 = vpop.f32.mrf.mxu3  ;;  %v1327_v42 = vadd.f32 %v1326_v40, %v1238_v36  ;;  %v1239_v44 = vpop.f32.mrf.mxu1  ;;  %v1151_v46 = vadd.f32 %v2691_v22, %v1150_v43 }
  0xf3   : > { %v2792_v47 = vadd.f32 %v1415_v41, %v1327_v42  ;;  %v1240_v50 = vadd.f32 %v1239_v44, %v1151_v46 }
  0xf8   : > { %v1328_v59 = vpop.f32.mrf.mxu2  ;;  %v1153_v0 = vpop.f32.mrf.mxu0 }
  0xf9   : > { %v1417_v60 = vpop.f32.mrf.mxu3  ;;  %v1329_v63 = vadd.f32 %v1328_v59, %v1240_v50  ;;  %v1242_v1 = vpop.f32.mrf.mxu1  ;;  %v1154_v6 = vadd.f32 %v2691_v22, %v1153_v0  ;;  %v421_v59 = vld [vmem:[%s2550_s13 + $0x798] sm:$0xff]  ;;  %v555_v0 = vpack.c.bf16 %v427_v56, %v419_v55 }
  0xfb   : > { %v2806_v7 = vadd.f32 %v1417_v60, %v1329_v63  ;;  %v1243_v8 = vadd.f32 %v1242_v1, %v1154_v6  ;;  %1192 = vmatmul.bf16.gmra.mxu0 %v538_v61  ;;  %v429_v60 = vld [vmem:[%s2550_s13 + $0x7d8] sm:$0xff]  ;;  %v554_v63 = vpack.c.bf16 %v426_v54, %v418_v53  ;;  %v556_v6 = vpack.c.bf16 %v428_v58, %v420_v57 }
  0xfc   : > { %1281 = vmatmul.bf16.gmra.mxu1 %v539_v62 }
  0xfd   : > { %1370 = vmatmul.bf16.gmra.mxu2 %v540_v2 }
  0xfe   : > { %1459 = vmatmul.bf16.gmra.mxu3 %v541_v4 }
 0x100   : > { %v1331_v9 = vpop.f32.mrf.mxu2  ;;  %v1155_v14 = vpop.f32.mrf.mxu0 }
 0x101   : > { %v1420_v10 = vpop.f32.mrf.mxu3  ;;  %v1332_v11 = vadd.f32 %v1331_v9, %v1243_v8  ;;  %v1244_v15 = vpop.f32.mrf.mxu1  ;;  %v1156_v16 = vadd.f32 %v2691_v22, %v1155_v14  ;;  %v557_v8 = vpack.c.bf16 %v429_v60, %v421_v59  ;;  %v198_v59 = vld [vmem:[%s2550_s13 + $0xa0] sm:$0xff] }
 0x102   : > { %v206_v60 = vld [vmem:[%s2550_s13 + $0xe0] sm:$0xff] }
 0x103   : > { %v2809_v17 = vadd.f32 %v1420_v10, %v1332_v11  ;;  %v1245_v18 = vadd.f32 %v1244_v15, %v1156_v16 }
 0x108   : > { %v1333_v28 = vpop.f32.mrf.mxu2  ;;  %v1158_v33 = vpop.f32.mrf.mxu0 }
 0x109   : > { %v1422_v29 = vpop.f32.mrf.mxu3  ;;  %v1334_v32 = vadd.f32 %v1333_v28, %v1245_v18  ;;  %v1247_v36 = vpop.f32.mrf.mxu1  ;;  %v1159_v39 = vadd.f32 %v2691_v22, %v1158_v33  ;;  %v184_v28 = vld [vmem:[%s2550_s13 + $0x30] sm:$0xff] }
 0x10b   : > { %v2820_v40 = vadd.f32 %v1422_v29, %v1334_v32  ;;  %v1248_v41 = vadd.f32 %v1247_v36, %v1159_v39  ;;  %1197 = vmatmul.bf16.gmra.mxu0 %v546_v30  ;;  %v192_v29 = vld [vmem:[%s2550_s13 + $0x70] sm:$0xff]  ;;  %v185_v30 = vld [vmem:[%s2550_s13 + $0x38] sm:$0xff]  ;;  %v438_v36 = vpack.c.bf16 %v190_v25, %v182_v24 }
 0x10c   : > { %1286 = vmatmul.bf16.gmra.mxu1 %v547_v31  ;;  %v193_v31 = vld [vmem:[%s2550_s13 + $0x78] sm:$0xff] }
 0x10d   : > { %1375 = vmatmul.bf16.gmra.mxu2 %v548_v37  ;;  %v439_v37 = vpack.c.bf16 %v191_v27, %v183_v26 }
 0x10e   : > { %1464 = vmatmul.bf16.gmra.mxu3 %v549_v38 }
 0x110   : > { %v1336_v42 = vpop.f32.mrf.mxu2  ;;  %v1160_v46 = vpop.f32.mrf.mxu0 }
 0x111   : > { %v1425_v43 = vpop.f32.mrf.mxu3  ;;  %v1337_v44 = vadd.f32 %v1336_v42, %v1248_v41  ;;  %v1249_v49 = vpop.f32.mrf.mxu1  ;;  %v1161_v50 = vadd.f32 %v2691_v22, %v1160_v46  ;;  %v440_v42 = vpack.c.bf16 %v192_v29, %v184_v28 }
 0x113   : > { %v2823_v51 = vadd.f32 %v1425_v43, %v1337_v44  ;;  %v1250_v52 = vadd.f32 %v1249_v49, %v1161_v50  ;;  %v441_v43 = vpack.c.bf16 %v193_v31, %v185_v30 }
 0x118   : > { %v1338_v61 = vpop.f32.mrf.mxu2  ;;  %v1163_v2 = vpop.f32.mrf.mxu0 }
 0x119   : > { %v1427_v62 = vpop.f32.mrf.mxu3  ;;  %v1339_v1 = vadd.f32 %v1338_v61, %v1250_v52  ;;  %v1252_v4 = vpop.f32.mrf.mxu1  ;;  %v1164_v9 = vadd.f32 %v2691_v22, %v1163_v2  ;;  %v199_v61 = vld [vmem:[%s2550_s13 + $0xa8] sm:$0xff]  ;;  %v209_v2 = vld [vmem:[%s2550_s13 + $0xf8] sm:$0xff] }
 0x11b   : > { %v2834_v10 = vadd.f32 %v1427_v62, %v1339_v1  ;;  %v1253_v11 = vadd.f32 %v1252_v4, %v1164_v9  ;;  %1202 = vmatmul.bf16.gmra.mxu0 %v554_v63  ;;  %v207_v62 = vld [vmem:[%s2550_s13 + $0xe8] sm:$0xff]  ;;  %v200_v63 = vld [vmem:[%s2550_s13 + $0xb0] sm:$0xff]  ;;  %v201_v1 = vld [vmem:[%s2550_s13 + $0xb8] sm:$0xff] }
 0x11c   : > { %1291 = vmatmul.bf16.gmra.mxu1 %v555_v0  ;;  %v208_v0 = vld [vmem:[%s2550_s13 + $0xf0] sm:$0xff]  ;;  %v447_v9 = vpack.c.bf16 %v207_v62, %v199_v61 }
 0x11d   : > { %1380 = vmatmul.bf16.gmra.mxu2 %v556_v6 }
 0x11e   : > { %1469 = vmatmul.bf16.gmra.mxu3 %v557_v8  ;;  %v446_v8 = vpack.c.bf16 %v206_v60, %v198_v59 }
 0x120   : > { %v1341_v14 = vpop.f32.mrf.mxu2  ;;  %v1165_v18 = vpop.f32.mrf.mxu0 }
 0x121   : > { %v1430_v15 = vpop.f32.mrf.mxu3  ;;  %v1342_v16 = vadd.f32 %v1341_v14, %v1253_v11  ;;  %v1254_v19 = vpop.f32.mrf.mxu1  ;;  %v1166_v20 = vadd.f32 %v2691_v22, %v1165_v18  ;;  %v449_v18 = vpack.c.bf16 %v209_v2, %v201_v1 }
 0x123   : > { %v2837_v21 = vadd.f32 %v1430_v15, %v1342_v16  ;;  %v1255_v23 = vadd.f32 %v1254_v19, %v1166_v20  ;;  %v448_v16 = vpack.c.bf16 %v208_v0, %v200_v63 }
 0x128   : > { %v1343_v32 = vpop.f32.mrf.mxu2  ;;  %v1168_v39 = vpop.f32.mrf.mxu0 }
 0x129   : > { %v1432_v33 = vpop.f32.mrf.mxu3  ;;  %v1344_v38 = vadd.f32 %v1343_v32, %v1255_v23  ;;  %v1257_v41 = vpop.f32.mrf.mxu1  ;;  %v1169_v44 = vadd.f32 %v2691_v22, %v1168_v39  ;;  %v214_v32 = vld [vmem:[%s2550_s13 + $0x120] sm:$0xff]  ;;  %v224_v39 = vld [vmem:[%s2550_s13 + $0x170] sm:$0xff] }
 0x12b   : > { %v2848_v46 = vadd.f32 %v1432_v33, %v1344_v38  ;;  %v1258_v49 = vadd.f32 %v1257_v41, %v1169_v44  ;;  %1483 = vmatmul.bf16.vlgmr.msrb.gmra.mxu0 %v438_v36  ;;  %v222_v33 = vld [vmem:[%s2550_s13 + $0x160] sm:$0xff]  ;;  %v215_v36 = vld [vmem:[%s2550_s13 + $0x128] sm:$0xff]  ;;  %v216_v38 = vld [vmem:[%s2550_s13 + $0x130] sm:$0xff] }
 0x12c   : > { %1572 = vmatmul.bf16.vlgmr.msrb.gmra.mxu1 %v439_v37  ;;  %v223_v37 = vld [vmem:[%s2550_s13 + $0x168] sm:$0xff]  ;;  %v217_v41 = vld [vmem:[%s2550_s13 + $0x138] sm:$0xff] }
 0x12d   : > { %1661 = vmatmul.bf16.vlgmr.msrb.gmra.mxu2 %v440_v42  ;;  %v225_v42 = vld [vmem:[%s2550_s13 + $0x178] sm:$0xff] }
 0x12e   : > { %2241 = vmatmul.msk.bf16.vlgmr.msrb.gmra.mxu3 %vm1066_vm1, %v441_v43 }
 0x130   : > { %v1346_v50 = vpop.f32.mrf.mxu2  ;;  %v1170_v54 = vpop.f32.mrf.mxu0 }
 0x131   : > { %v1435_v52 = vpop.f32.mrf.mxu3  ;;  %v1347_v53 = vadd.f32 %v1346_v50, %v1258_v49  ;;  %v1259_v55 = vpop.f32.mrf.mxu1  ;;  %v1171_v56 = vadd.f32 %v2691_v22, %v1170_v54  ;;  %v454_v49 = vpack.c.bf16 %v222_v33, %v214_v32  ;;  %v455_v50 = vpack.c.bf16 %v223_v37, %v215_v36 }
 0x133   : > { %v2852_v57 = vadd.f32 %v1435_v52, %v1347_v53  ;;  %v1260_v58 = vadd.f32 %v1259_v55, %v1171_v56  ;;  %v456_v55 = vpack.c.bf16 %v224_v39, %v216_v38  ;;  %v457_v56 = vpack.c.bf16 %v225_v42, %v217_v41 }
 0x138   : > { %v1348_v4 = vpop.f32.mrf.mxu2  ;;  %v1173_v14 = vpop.f32.mrf.mxu0 }
 0x139   : > { %v1437_v6 = vpop.f32.mrf.mxu3  ;;  %v1349_v11 = vadd.f32 %v1348_v4, %v1260_v58  ;;  %v1262_v15 = vpop.f32.mrf.mxu1  ;;  %v1174_v19 = vadd.f32 %v2691_v22, %v1173_v14  ;;  %v239_v14 = vld [vmem:[%s2550_s13 + $0x1e8] sm:$0xff] }
 0x13b   : > { %v2863_v20 = vadd.f32 %v1437_v6, %v1349_v11  ;;  %v1263_v23 = vadd.f32 %v1262_v15, %v1174_v19  ;;  %1488 = vmatmul.bf16.gmra.mxu0 %v446_v8  ;;  %v230_v8 = vld [vmem:[%s2550_s13 + $0x1a0] sm:$0xff]  ;;  %v231_v11 = vld [vmem:[%s2550_s13 + $0x1a8] sm:$0xff]  ;;  %v232_v15 = vld [vmem:[%s2550_s13 + $0x1b0] sm:$0xff] }
 0x13c   : > { %1577 = vmatmul.bf16.gmra.mxu1 %v447_v9  ;;  %v238_v9 = vld [vmem:[%s2550_s13 + $0x1e0] sm:$0xff]  ;;  %v241_v19 = vld [vmem:[%s2550_s13 + $0x1f8] sm:$0xff] }
 0x13d   : > { %1666 = vmatmul.bf16.gmra.mxu2 %v448_v16  ;;  %v240_v16 = vld [vmem:[%s2550_s13 + $0x1f0] sm:$0xff] }
 0x13e   : > { %2242 = vmatmul.msk.bf16.gmra.mxu3 %vm1066_vm1, %v449_v18  ;;  %v233_v18 = vld [vmem:[%s2550_s13 + $0x1b8] sm:$0xff] }
 0x13f   : > { %v465_v32 = vpack.c.bf16 %v241_v19, %v233_v18 }
 0x140   : > { %v1351_v24 = vpop.f32.mrf.mxu2  ;;  %v1175_v27 = vpop.f32.mrf.mxu0 }
 0x141   : > { %v1440_v25 = vpop.f32.mrf.mxu3  ;;  %v1352_v26 = vadd.f32 %v1351_v24, %v1263_v23  ;;  %v1264_v28 = vpop.f32.mrf.mxu1  ;;  %v1176_v29 = vadd.f32 %v2691_v22, %v1175_v27 }
 0x143   : > { %v2867_v30 = vadd.f32 %v1440_v25, %v1352_v26  ;;  %v1265_v31 = vadd.f32 %v1264_v28, %v1176_v29  ;;  %v462_v25 = vpack.c.bf16 %v238_v9, %v230_v8  ;;  %v463_v26 = vpack.c.bf16 %v239_v14, %v231_v11 }
 0x148   : > { %v1353_v43 = vpop.f32.mrf.mxu2  ;;  %v1178_v53 = vpop.f32.mrf.mxu0 }
 0x149   : > { %v1442_v44 = vpop.f32.mrf.mxu3  ;;  %v1354_v52 = vadd.f32 %v1353_v43, %v1265_v31  ;;  %v1267_v54 = vpop.f32.mrf.mxu1  ;;  %v1179_v58 = vadd.f32 %v2691_v22, %v1178_v53  ;;  %v464_v31 = vpack.c.bf16 %v240_v16, %v232_v15  ;;  %v254_v53 = vld [vmem:[%s2550_s13 + $0x260] sm:$0xff] }
 0x14b   : > { %v2878_v59 = vadd.f32 %v1442_v44, %v1354_v52  ;;  %v1268_v60 = vadd.f32 %v1267_v54, %v1179_v58  ;;  %1493 = vmatmul.bf16.gmra.mxu0 %v454_v49  ;;  %v246_v52 = vld [vmem:[%s2550_s13 + $0x220] sm:$0xff]  ;;  %v247_v54 = vld [vmem:[%s2550_s13 + $0x228] sm:$0xff]  ;;  %v256_v58 = vld [vmem:[%s2550_s13 + $0x270] sm:$0xff] }
 0x14c   : > { %1582 = vmatmul.bf16.gmra.mxu1 %v455_v50 }
 0x14d   : > { %1671 = vmatmul.bf16.gmra.mxu2 %v456_v55  ;;  %v255_v55 = vld [vmem:[%s2550_s13 + $0x268] sm:$0xff] }
 0x14e   : > { %2243 = vmatmul.msk.bf16.gmra.mxu3 %vm1066_vm1, %v457_v56  ;;  %v248_v56 = vld [vmem:[%s2550_s13 + $0x230] sm:$0xff] }
 0x14f   : > { %v472_v9 = vpack.c.bf16 %v256_v58, %v248_v56 }
 0x150   : > { %v1356_v61 = vpop.f32.mrf.mxu2  ;;  %v1180_v0 = vpop.f32.mrf.mxu0 }
 0x151   : > { %v1445_v62 = vpop.f32.mrf.mxu3  ;;  %v1357_v63 = vadd.f32 %v1356_v61, %v1268_v60  ;;  %v1269_v1 = vpop.f32.mrf.mxu1  ;;  %v1181_v2 = vadd.f32 %v2691_v22, %v1180_v0  ;;  %v249_v60 = vld [vmem:[%s2550_s13 + $0x238] sm:$0xff]  ;;  %v470_v0 = vpack.c.bf16 %v254_v53, %v246_v52 }
 0x152   : > { %v257_v61 = vld [vmem:[%s2550_s13 + $0x278] sm:$0xff] }
 0x153   : > { %v2882_v4 = vadd.f32 %v1445_v62, %v1357_v63  ;;  %v1270_v6 = vadd.f32 %v1269_v1, %v1181_v2  ;;  %v471_v1 = vpack.c.bf16 %v255_v55, %v247_v54  ;;  %v473_v11 = vpack.c.bf16 %v257_v61, %v249_v60 }
 0x158   : > { %v1358_v23 = vpop.f32.mrf.mxu2  ;;  %v1183_v28 = vpop.f32.mrf.mxu0 }
 0x159   : > { %v1447_v24 = vpop.f32.mrf.mxu3  ;;  %v1359_v27 = vadd.f32 %v1358_v23, %v1270_v6  ;;  %v1272_v29 = vpop.f32.mrf.mxu1  ;;  %v1184_v33 = vadd.f32 %v2691_v22, %v1183_v28 }
 0x15b   : > { %v2893_v36 = vadd.f32 %v1447_v24, %v1359_v27  ;;  %v1273_v37 = vadd.f32 %v1272_v29, %v1184_v33  ;;  %1498 = vmatmul.bf16.gmra.mxu0 %v462_v25  ;;  %v262_v29 = vld [vmem:[%s2550_s13 + $0x2a0] sm:$0xff]  ;;  %v271_v33 = vld [vmem:[%s2550_s13 + $0x2e8] sm:$0xff] }
 0x15c   : > { %1587 = vmatmul.bf16.gmra.mxu1 %v463_v26 }
 0x15d   : > { %1676 = vmatmul.bf16.gmra.mxu2 %v464_v31  ;;  %v270_v31 = vld [vmem:[%s2550_s13 + $0x2e0] sm:$0xff] }
 0x15e   : > { %2244 = vmatmul.msk.bf16.gmra.mxu3 %vm1066_vm1, %v465_v32  ;;  %v263_v32 = vld [vmem:[%s2550_s13 + $0x2a8] sm:$0xff] }
 0x160   : > { %v1361_v38 = vpop.f32.mrf.mxu2  ;;  %v1185_v42 = vpop.f32.mrf.mxu0 }
 0x161   : > { %v1450_v39 = vpop.f32.mrf.mxu3  ;;  %v1362_v41 = vadd.f32 %v1361_v38, %v1273_v37  ;;  %v1274_v43 = vpop.f32.mrf.mxu1  ;;  %v1186_v44 = vadd.f32 %v2691_v22, %v1185_v42  ;;  %v264_v37 = vld [vmem:[%s2550_s13 + $0x2b0] sm:$0xff] }
 0x162   : > { %v272_v38 = vld [vmem:[%s2550_s13 + $0x2f0] sm:$0xff] }
 0x163   : > { %v2897_v49 = vadd.f32 %v1450_v39, %v1362_v41  ;;  %v1275_v50 = vadd.f32 %v1274_v43, %v1186_v44  ;;  %v265_v39 = vld [vmem:[%s2550_s13 + $0x2b8] sm:$0xff]  ;;  %v478_v44 = vpack.c.bf16 %v270_v31, %v262_v29  ;;  %v480_v55 = vpack.c.bf16 %v272_v38, %v264_v37 }
 0x164   : > { %v273_v41 = vld [vmem:[%s2550_s13 + $0x2f8] sm:$0xff] }
 0x165   : > { %v481_v56 = vpack.c.bf16 %v273_v41, %v265_v39 }
 0x168   : > { %v1363_v62 = vpop.f32.mrf.mxu2  ;;  %v1188_v6 = vpop.f32.mrf.mxu0 }
 0x169   : > { %v1452_v63 = vpop.f32.mrf.mxu3  ;;  %v1364_v2 = vadd.f32 %v1363_v62, %v1275_v50  ;;  %v1277_v8 = vpop.f32.mrf.mxu1  ;;  %v1189_v14 = vadd.f32 %v2691_v22, %v1188_v6  ;;  %v479_v50 = vpack.c.bf16 %v271_v33, %v263_v32 }
 0x16b   : > { %v2908_v15 = vadd.f32 %v1452_v63, %v1364_v2  ;;  %v1278_v16 = vadd.f32 %v1277_v8, %v1189_v14  ;;  %1503 = vmatmul.bf16.gmra.mxu0 %v470_v0  ;;  %v286_v14 = vld [vmem:[%s2550_s13 + $0x360] sm:$0xff] }
 0x16c   : > { %1592 = vmatmul.bf16.gmra.mxu1 %v471_v1 }
 0x16d   : > { %1681 = vmatmul.bf16.gmra.mxu2 %v472_v9 }
 0x16e   : > { %2245 = vmatmul.msk.bf16.gmra.mxu3 %vm1066_vm1, %v473_v11  ;;  %v278_v11 = vld [vmem:[%s2550_s13 + $0x320] sm:$0xff] }
 0x16f   : > { %v486_v29 = vpack.c.bf16 %v286_v14, %v278_v11 }
 0x170   : > { %v1366_v18 = vpop.f32.mrf.mxu2  ;;  %v1190_v24 = vpop.f32.mrf.mxu0 }
 0x171   : > { %v1455_v19 = vpop.f32.mrf.mxu3  ;;  %v1367_v23 = vadd.f32 %v1366_v18, %v1278_v16  ;;  %v1279_v25 = vpop.f32.mrf.mxu1  ;;  %v1191_v26 = vadd.f32 %v2691_v22, %v1190_v24  ;;  %v279_v16 = vld [vmem:[%s2550_s13 + $0x328] sm:$0xff]  ;;  %v281_v24 = vld [vmem:[%s2550_s13 + $0x338] sm:$0xff] }
 0x172   : > { %v287_v18 = vld [vmem:[%s2550_s13 + $0x368] sm:$0xff] }
 0x173   : > { %v2912_v27 = vadd.f32 %v1455_v19, %v1367_v23  ;;  %v1280_v28 = vadd.f32 %v1279_v25, %v1191_v26  ;;  %v280_v19 = vld [vmem:[%s2550_s13 + $0x330] sm:$0xff]  ;;  %v289_v25 = vld [vmem:[%s2550_s13 + $0x378] sm:$0xff]  ;;  %v487_v31 = vpack.c.bf16 %v287_v18, %v279_v16 }
 0x174   : > { %v288_v23 = vld [vmem:[%s2550_s13 + $0x370] sm:$0xff]  ;;  %v489_v39 = vpack.c.bf16 %v289_v25, %v281_v24 }
 0x175   : > { %v488_v38 = vpack.c.bf16 %v288_v23, %v280_v19 }
 0x178   : > { %v1368_v42 = vpop.f32.mrf.mxu2  ;;  %v1193_v53 = vpop.f32.mrf.mxu0 }
 0x179   : > { %v1457_v43 = vpop.f32.mrf.mxu3  ;;  %v1369_v52 = vadd.f32 %v1368_v42, %v1280_v28  ;;  %v1282_v54 = vpop.f32.mrf.mxu1  ;;  %v1194_v58 = vadd.f32 %v2691_v22, %v1193_v53 }
 0x17b   : > { %v2923_v60 = vadd.f32 %v1457_v43, %v1369_v52  ;;  %v1283_v61 = vadd.f32 %v1282_v54, %v1194_v58  ;;  %1508 = vmatmul.bf16.gmra.mxu0 %v478_v44 }
 0x17c   : > { %1597 = vmatmul.bf16.gmra.mxu1 %v479_v50 }
 0x17d   : > { %1686 = vmatmul.bf16.gmra.mxu2 %v480_v55 }
 0x17e   : > { %2246 = vmatmul.msk.bf16.gmra.mxu3 %vm1066_vm1, %v481_v56 }
 0x180   : > { %v1371_v62 = vpop.f32.mrf.mxu2  ;;  %v1195_v1 = vpop.f32.mrf.mxu0 }
 0x181   : > { %v1460_v63 = vpop.f32.mrf.mxu3  ;;  %v1372_v0 = vadd.f32 %v1371_v62, %v1283_v61  ;;  %v1284_v2 = vpop.f32.mrf.mxu1  ;;  %v1196_v6 = vadd.f32 %v2691_v22, %v1195_v1  ;;  %v294_v61 = vld [vmem:[%s2550_s13 + $0x3a0] sm:$0xff]  ;;  %v296_v1 = vld [vmem:[%s2550_s13 + $0x3b0] sm:$0xff] }
 0x182   : > { %v302_v62 = vld [vmem:[%s2550_s13 + $0x3e0] sm:$0xff] }
 0x183   : > { %v2927_v8 = vadd.f32 %v1460_v63, %v1372_v0  ;;  %v1285_v9 = vadd.f32 %v1284_v2, %v1196_v6  ;;  %v295_v63 = vld [vmem:[%s2550_s13 + $0x3a8] sm:$0xff]  ;;  %v304_v2 = vld [vmem:[%s2550_s13 + $0x3f0] sm:$0xff]  ;;  %v297_v6 = vld [vmem:[%s2550_s13 + $0x3b8] sm:$0xff]  ;;  %v494_v16 = vpack.c.bf16 %v302_v62, %v294_v61 }
 0x184   : > { %v303_v0 = vld [vmem:[%s2550_s13 + $0x3e8] sm:$0xff]  ;;  %v496_v25 = vpack.c.bf16 %v304_v2, %v296_v1  ;;  %v313_v61 = vld [vmem:[%s2550_s13 + $0x438] sm:$0xff] }
 0x185   : > { %v495_v18 = vpack.c.bf16 %v303_v0, %v295_v63  ;;  %v321_v62 = vld [vmem:[%s2550_s13 + $0x478] sm:$0xff] }
 0x188   : > { %v1373_v26 = vpop.f32.mrf.mxu2  ;;  %v1198_v33 = vpop.f32.mrf.mxu0 }
 0x189   : > { %v1462_v28 = vpop.f32.mrf.mxu3  ;;  %v1374_v32 = vadd.f32 %v1373_v26, %v1285_v9  ;;  %v1287_v37 = vpop.f32.mrf.mxu1  ;;  %v1199_v41 = vadd.f32 %v2691_v22, %v1198_v33  ;;  %v305_v9 = vld [vmem:[%s2550_s13 + $0x3f8] sm:$0xff]  ;;  %v2426_v26 = vld [vmem:[%s3093_s2] ss:$0 sm:$0xff] }
 0x18b   : > { %v2938_v42 = vadd.f32 %v1462_v28, %v1374_v32  ;;  %v1288_v43 = vadd.f32 %v1287_v37, %v1199_v41  ;;  %1513 = vmatmul.bf16.gmra.mxu0 %v486_v29 }
 0x18c   : > { %1602 = vmatmul.bf16.gmra.mxu1 %v487_v31 }
 0x18d   : > { %1691 = vmatmul.bf16.gmra.mxu2 %v488_v38 }
 0x18e   : > { %2247 = vmatmul.msk.bf16.gmra.mxu3 %vm1066_vm1, %v489_v39 }
 0x190   : > { %v1376_v44 = vpop.f32.mrf.mxu2  ;;  %v1200_v53 = vpop.f32.mrf.mxu0 }
 0x191   : > { %v1465_v50 = vpop.f32.mrf.mxu3  ;;  %v1377_v52 = vadd.f32 %v1376_v44, %v1288_v43  ;;  %v1289_v54 = vpop.f32.mrf.mxu1  ;;  %v1201_v55 = vadd.f32 %v2691_v22, %v1200_v53  ;;  %v497_v22 = vpack.c.bf16 %v305_v9, %v297_v6  ;;  %v311_v53 = vld [vmem:[%s2550_s13 + $0x428] sm:$0xff] }
 0x193   : > { %v2942_v56 = vadd.f32 %v1465_v50, %v1377_v52  ;;  %v1290_v58 = vadd.f32 %v1289_v54, %v1201_v55  ;;  %v310_v50 = vld [vmem:[%s2550_s13 + $0x420] sm:$0xff]  ;;  %v319_v54 = vld [vmem:[%s2550_s13 + $0x468] sm:$0xff]  ;;  %v312_v55 = vld [vmem:[%s2550_s13 + $0x430] sm:$0xff] }
 0x194   : > { %v318_v52 = vld [vmem:[%s2550_s13 + $0x460] sm:$0xff]  ;;  %v503_v2 = vpack.c.bf16 %v319_v54, %v311_v53 }
 0x195   : > { %v502_v1 = vpack.c.bf16 %v318_v52, %v310_v50  ;;  %v337_v50 = vld [vmem:[%s2550_s13 + $0x4f8] sm:$0xff] }
 0x198   : > { %v1378_v11 = vpop.f32.mrf.mxu2  ;;  %v1203_v23 = vpop.f32.mrf.mxu0 }
 0x199   : > { %v1467_v14 = vpop.f32.mrf.mxu3  ;;  %v1379_v19 = vadd.f32 %v1378_v11, %v1290_v58  ;;  %v1292_v24 = vpop.f32.mrf.mxu1  ;;  %v1204_v28 = vadd.f32 %v2426_v26, %v1203_v23  ;;  %v320_v58 = vld [vmem:[%s2550_s13 + $0x470] sm:$0xff] }
 0x19b   : > { %v2955_v29 = vadd.f32 %v1467_v14, %v1379_v19  ;;  %v1293_v31 = vadd.f32 %v1292_v24, %v1204_v28  ;;  %1518 = vmatmul.bf16.gmra.mxu0 %v494_v16  ;;  %v504_v14 = vpack.c.bf16 %v320_v58, %v312_v55  ;;  %v505_v16 = vpack.c.bf16 %v321_v62, %v313_v61 }
 0x19c   : > { %1607 = vmatmul.bf16.gmra.mxu1 %v495_v18 }
 0x19d   : > { %1696 = vmatmul.bf16.gmra.mxu2 %v496_v25 }
 0x19e   : > { %2248 = vmatmul.msk.bf16.gmra.mxu3 %vm1066_vm1, %v497_v22 }
 0x1a0   : > { %v1381_v32 = vpop.f32.mrf.mxu2  ;;  %v1205_v38 = vpop.f32.mrf.mxu0 }
 0x1a1   : > { %v1470_v33 = vpop.f32.mrf.mxu3  ;;  %v1382_v37 = vadd.f32 %v1381_v32, %v1293_v31  ;;  %v1294_v39 = vpop.f32.mrf.mxu1  ;;  %v1206_v41 = vadd.f32 %v2426_v26, %v1205_v38  ;;  %v326_v31 = vld [vmem:[%s2550_s13 + $0x4a0] sm:$0xff]  ;;  %v335_v38 = vld [vmem:[%s2550_s13 + $0x4e8] sm:$0xff] }
 0x1a2   : > { %v334_v32 = vld [vmem:[%s2550_s13 + $0x4e0] sm:$0xff] }
 0x1a3   : > { %v2958_v43 = vadd.f32 %v1470_v33, %v1382_v37  ;;  %v1295_v44 = vadd.f32 %v1294_v39, %v1206_v41  ;;  %v327_v37 = vld [vmem:[%s2550_s13 + $0x4a8] sm:$0xff]  ;;  %v328_v39 = vld [vmem:[%s2550_s13 + $0x4b0] sm:$0xff]  ;;  %v510_v54 = vpack.c.bf16 %v334_v32, %v326_v31 }
 0x1a4   : > { %v336_v41 = vld [vmem:[%s2550_s13 + $0x4f0] sm:$0xff]  ;;  %v511_v55 = vpack.c.bf16 %v335_v38, %v327_v37  ;;  %v343_v31 = vld [vmem:[%s2550_s13 + $0x528] sm:$0xff]  ;;  %v345_v38 = vld [vmem:[%s2550_s13 + $0x538] sm:$0xff] }
 0x1a5   : > { %v351_v32 = vld [vmem:[%s2550_s13 + $0x568] sm:$0xff]  ;;  %v352_v37 = vld [vmem:[%s2550_s13 + $0x570] sm:$0xff] }
 0x1a8   : > { %v1383_v63 = vpop.f32.mrf.mxu2  ;;  %v1484_v9 = vpop.f32.mrf.mxu0 }
 0x1a9   : > { %v1472_v0 = vpop.f32.mrf.mxu3  ;;  %v1384_v6 = vadd.f32 %v1383_v63, %v1295_v44  ;;  %v1573_v11 = vpop.f32.mrf.mxu1  ;;  %v1485_v19 = vadd.f32 %v1484_v9, %v2712_v48  ;;  %v329_v44 = vld [vmem:[%s2550_s13 + $0x4b8] sm:$0xff] }
 0x1ab   : > { %v2968_v18 = vadd.f32 %v1472_v0, %v1384_v6  ;;  %1523 = vmatmul.bf16.gmra.mxu0 %v502_v1  ;;  %v1574_v26 = vadd.f32 %v1573_v11, %v1485_v19  ;;  %v513_v0 = vpack.c.bf16 %v337_v50, %v329_v44 }
 0x1ac   : > { %1612 = vmatmul.bf16.gmra.mxu1 %v503_v2 }
 0x1ad   : > { %1701 = vmatmul.bf16.gmra.mxu2 %v504_v14 }
 0x1ae   : > { %2249 = vmatmul.msk.bf16.gmra.mxu3 %vm1066_vm1, %v505_v16 }
 0x1b0   : > { %v1662_v23 = vpop.f32.mrf.mxu2  ;;  %v1486_v25 = vpop.f32.mrf.mxu0 }
 0x1b1   : > { %v1751_v24 = vpop.f32.mrf.mxu3  ;;  %v1575_v22 = vpop.f32.mrf.mxu1  ;;  %v1487_v28 = vadd.f32 %v1486_v25, %v2726_v5  ;;  %v1663_v33 = vadd.f32 %v1662_v23, %v1574_v26  ;;  %v512_v5 = vpack.c.bf16 %v336_v41, %v328_v39  ;;  %v350_v26 = vld [vmem:[%s2550_s13 + $0x560] sm:$0xff]  ;;  %v353_v39 = vld [vmem:[%s2550_s13 + $0x578] sm:$0xff] }
 0x1b3   : > { %v1576_v52 = vadd.f32 %v1575_v22, %v1487_v28  ;;  %v1752_v58 = vadd.f32 %v1751_v24, %v1663_v33  ;;  %v342_v22 = vld [vmem:[%s2550_s13 + $0x520] sm:$0xff]  ;;  %v344_v33 = vld [vmem:[%s2550_s13 + $0x530] sm:$0xff] }
 0x1b4   : > { %v518_v50 = vpack.c.bf16 %v350_v26, %v342_v22  ;;  %v360_v22 = vld [vmem:[%s2550_s13 + $0x5b0] sm:$0xff] }
 0x1b5   : > { %v1831_v2 = vmax.f32 %v1752_v58, 0.0  ;;  %v521_v58 = vpack.c.bf16 %v353_v39, %v345_v38  ;;  %v368_v26 = vld [vmem:[%s2550_s13 + $0x5f0] sm:$0xff] }
 0x1b8   : > { %v1664_v53 = vpop.f32.mrf.mxu2  ;;  %v1489_v62 = vpop.f32.mrf.mxu0 }
 0x1b9   : > { %v1753_v48 = vpop.f32.mrf.mxu3  ;;  %v1665_v61 = vadd.f32 %v1664_v53, %v1576_v52  ;;  %v1578_v63 = vpop.f32.mrf.mxu1  ;;  %v1490_v11 = vadd.f32 %v1489_v62, %v2729_v13  ;;  %v519_v52 = vpack.c.bf16 %v351_v32, %v343_v31  ;;  %v369_v31 = vld [vmem:[%s2550_s13 + $0x5f8] sm:$0xff] }
 0x1bb   : > { %v1754_v1 = vadd.f32 %v1753_v48, %v1665_v61  ;;  %1528 = vmatmul.bf16.gmra.mxu0 %v510_v54  ;;  %v1579_v24 = vadd.f32 %v1578_v63, %v1490_v11 }
 0x1bc   : > { %1617 = vmatmul.bf16.gmra.mxu1 %v511_v55 }
 0x1bd   : > { %v1832_v6 = vmax.f32 %v1754_v1, 0.0  ;;  %1706 = vmatmul.bf16.gmra.mxu2 %v512_v5 }
 0x1be   : > { %2250 = vmatmul.msk.bf16.gmra.mxu3 %vm1066_vm1, %v513_v0 }
 0x1bf   : > { %v2325_v9 = vpack.c.bf16 %v1832_v6, %v1831_v2 }
 0x1c0   : > { %v1667_v14 = vpop.f32.mrf.mxu2  ;;  %v1491_v19 = vpop.f32.mrf.mxu0 }
 0x1c1   : > { %v1756_v16 = vpop.f32.mrf.mxu3  ;;  %2326 = vst [vmem:[%s2986_s29] sm:$0xff] %v2325_v9   ;;  %v1580_v23 = vpop.f32.mrf.mxu1  ;;  %v1492_v25 = vadd.f32 %v1491_v19, %v2743_v35  ;;  %v1668_v28 = vadd.f32 %v1667_v14, %v1579_v24  ;;  %v520_v35 = vpack.c.bf16 %v352_v37, %v344_v33  ;;  %v366_v19 = vld [vmem:[%s2550_s13 + $0x5e0] sm:$0xff]  ;;  %v359_v24 = vld [vmem:[%s2550_s13 + $0x5a8] sm:$0xff] }
 0x1c3   : > { %v1581_v41 = vadd.f32 %v1580_v23, %v1492_v25  ;;  %v1757_v53 = vadd.f32 %v1756_v16, %v1668_v28  ;;  %v358_v16 = vld [vmem:[%s2550_s13 + $0x5a0] sm:$0xff]  ;;  %v367_v25 = vld [vmem:[%s2550_s13 + $0x5e8] sm:$0xff]  ;;  %v361_v28 = vld [vmem:[%s2550_s13 + $0x5b8] sm:$0xff] }
 0x1c4   : > { %v526_v37 = vpack.c.bf16 %v366_v19, %v358_v16  ;;  %v527_v38 = vpack.c.bf16 %v367_v25, %v359_v24  ;;  %v377_v16 = vld [vmem:[%s2550_s13 + $0x638] sm:$0xff] }
 0x1c5   : > { %v1833_v62 = vmax.f32 %v1757_v53, 0.0  ;;  %v385_v19 = vld [vmem:[%s2550_s13 + $0x678] sm:$0xff] }
 0x1c8   : > { %v1669_v13 = vpop.f32.mrf.mxu2  ;;  %v1494_v54 = vpop.f32.mrf.mxu0 }
 0x1c9   : > { %v1758_v44 = vpop.f32.mrf.mxu3  ;;  %v1670_v48 = vadd.f32 %v1669_v13, %v1581_v41  ;;  %v1583_v55 = vpop.f32.mrf.mxu1  ;;  %v1495_v0 = vadd.f32 %v1494_v54, %v2752_v45 }
 0x1cb   : > { %v1759_v61 = vadd.f32 %v1758_v44, %v1670_v48  ;;  %1533 = vmatmul.bf16.gmra.mxu0 %v518_v50  ;;  %v1584_v11 = vadd.f32 %v1583_v55, %v1495_v0  ;;  %v529_v50 = vpack.c.bf16 %v369_v31, %v361_v28  ;;  %v374_v0 = vld [vmem:[%s2550_s13 + $0x620] sm:$0xff] }
 0x1cc   : > { %1622 = vmatmul.bf16.gmra.mxu1 %v519_v52 }
 0x1cd   : > { %v1834_v63 = vmax.f32 %v1759_v61, 0.0  ;;  %1711 = vmatmul.bf16.gmra.mxu2 %v520_v35 }
 0x1ce   : > { %2251 = vmatmul.msk.bf16.gmra.mxu3 %vm1066_vm1, %v521_v58 }
 0x1cf   : > { %v2330_v5 = vpack.c.bf16 %v1834_v63, %v1833_v62 }
 0x1d0   : > { %v1672_v1 = vpop.f32.mrf.mxu2  ;;  %v1496_v6 = vpop.f32.mrf.mxu0 }
 0x1d1   : > { %v1761_v2 = vpop.f32.mrf.mxu3  ;;  %2402 = vst [vmem:[%s2986_s29 + $0x8] sm:$0xff] %v2330_v5   ;;  %v1585_v9 = vpop.f32.mrf.mxu1  ;;  %v1497_v14 = vadd.f32 %v1496_v6, %v2766_v3  ;;  %v1673_v23 = vadd.f32 %v1672_v1, %v1584_v11  ;;  %v528_v3 = vpack.c.bf16 %v368_v26, %v360_v22  ;;  %v382_v1 = vld [vmem:[%s2550_s13 + $0x660] sm:$0xff]  ;;  %v375_v6 = vld [vmem:[%s2550_s13 + $0x628] sm:$0xff]  ;;  %v376_v11 = vld [vmem:[%s2550_s13 + $0x630] sm:$0xff] }
 0x1d2   : > { %v534_v25 = vpack.c.bf16 %v382_v1, %v374_v0 }
 0x1d3   : > { %v1586_v32 = vadd.f32 %v1585_v9, %v1497_v14  ;;  %v1762_v39 = vadd.f32 %v1761_v2, %v1673_v23  ;;  %v383_v9 = vld [vmem:[%s2550_s13 + $0x668] sm:$0xff]  ;;  %v384_v14 = vld [vmem:[%s2550_s13 + $0x670] sm:$0xff] }
 0x1d4   : > { %v535_v22 = vpack.c.bf16 %v383_v9, %v375_v6 }
 0x1d5   : > { %v1835_v53 = vmax.f32 %v1762_v39, 0.0 }
 0x1d8   : > { %v1674_v45 = vpop.f32.mrf.mxu2  ;;  %v1499_v13 = vpop.f32.mrf.mxu0 }
 0x1d9   : > { %v1763_v33 = vpop.f32.mrf.mxu3  ;;  %v1675_v41 = vadd.f32 %v1674_v45, %v1586_v32  ;;  %v1588_v44 = vpop.f32.mrf.mxu1  ;;  %v1500_v55 = vadd.f32 %v1499_v13, %v2769_v12  ;;  %v537_v45 = vpack.c.bf16 %v385_v19, %v377_v16 }
 0x1db   : > { %v1764_v52 = vadd.f32 %v1763_v33, %v1675_v41  ;;  %1538 = vmatmul.bf16.gmra.mxu0 %v526_v37  ;;  %v1589_v63 = vadd.f32 %v1588_v44, %v1500_v55 }
 0x1dc   : > { %1627 = vmatmul.bf16.gmra.mxu1 %v527_v38 }
 0x1dd   : > { %v1836_v48 = vmax.f32 %v1764_v52, 0.0  ;;  %1716 = vmatmul.bf16.gmra.mxu2 %v528_v3 }
 0x1de   : > { %2252 = vmatmul.msk.bf16.gmra.mxu3 %vm1066_vm1, %v529_v50 }
 0x1df   : > { %v2335_v54 = vpack.c.bf16 %v1836_v48, %v1835_v53  ;;  %v390_v48 = vld [vmem:[%s2550_s13 + $0x6a0] sm:$0xff] }
 0x1e0   : > { %v1677_v35 = vpop.f32.mrf.mxu2  ;;  %v1501_v61 = vpop.f32.mrf.mxu0 }
 0x1e1   : > { %v1766_v58 = vpop.f32.mrf.mxu3  ;;  %2403 = vst [vmem:[%s2986_s29 + $0x10] sm:$0xff] %v2335_v54   ;;  %v1590_v62 = vpop.f32.mrf.mxu1  ;;  %v1502_v5 = vadd.f32 %v1501_v61, %v2780_v34  ;;  %v1678_v2 = vadd.f32 %v1677_v35, %v1589_v63  ;;  %v536_v34 = vpack.c.bf16 %v384_v14, %v376_v11  ;;  %v398_v54 = vld [vmem:[%s2550_s13 + $0x6e0] sm:$0xff]  ;;  %v391_v35 = vld [vmem:[%s2550_s13 + $0x6a8] sm:$0xff]  ;;  %v392_v61 = vld [vmem:[%s2550_s13 + $0x6b0] sm:$0xff] }
 0x1e2   : > { %v393_v63 = vld [vmem:[%s2550_s13 + $0x6b8] sm:$0xff] }
 0x1e3   : > { %v1591_v23 = vadd.f32 %v1590_v62, %v1502_v5  ;;  %v1767_v26 = vadd.f32 %v1766_v58, %v1678_v2  ;;  %v399_v58 = vld [vmem:[%s2550_s13 + $0x6e8] sm:$0xff]  ;;  %v400_v62 = vld [vmem:[%s2550_s13 + $0x6f0] sm:$0xff]  ;;  %v401_v5 = vld [vmem:[%s2550_s13 + $0x6f8] sm:$0xff]  ;;  %v542_v2 = vpack.c.bf16 %v398_v54, %v390_v48 }
 0x1e4   : > { %v543_v6 = vpack.c.bf16 %v399_v58, %v391_v35  ;;  %v545_v19 = vpack.c.bf16 %v401_v5, %v393_v63 }
 0x1e5   : > { %v1837_v37 = vmax.f32 %v1767_v26, 0.0 }
 0x1e8   : > { %v1679_v12 = vpop.f32.mrf.mxu2  ;;  %v1504_v31 = vpop.f32.mrf.mxu0 }
 0x1e9   : > { %v1768_v24 = vpop.f32.mrf.mxu3  ;;  %v1680_v28 = vadd.f32 %v1679_v12, %v1591_v23  ;;  %v1593_v32 = vpop.f32.mrf.mxu1  ;;  %v1505_v41 = vadd.f32 %v1504_v31, %v2792_v47 }
 0x1eb   : > { %v1769_v33 = vadd.f32 %v1768_v24, %v1680_v28  ;;  %1543 = vmatmul.bf16.gmra.mxu0 %v534_v25  ;;  %v1594_v52 = vadd.f32 %v1593_v32, %v1505_v41  ;;  %v415_v41 = vld [vmem:[%s2550_s13 + $0x768] sm:$0xff] }
 0x1ec   : > { %1632 = vmatmul.bf16.gmra.mxu1 %v535_v22 }
 0x1ed   : > { %v1838_v38 = vmax.f32 %v1769_v33, 0.0  ;;  %1721 = vmatmul.bf16.gmra.mxu2 %v536_v34  ;;  %v406_v33 = vld [vmem:[%s2550_s13 + $0x720] sm:$0xff] }
 0x1ee   : > { %2253 = vmatmul.msk.bf16.gmra.mxu3 %vm1066_vm1, %v537_v45 }
 0x1ef   : > { %v2340_v39 = vpack.c.bf16 %v1838_v38, %v1837_v37  ;;  %v414_v37 = vld [vmem:[%s2550_s13 + $0x760] sm:$0xff] }
 0x1f0   : > { %v1682_v13 = vpop.f32.mrf.mxu2  ;;  %v1506_v3 = vpop.f32.mrf.mxu0  ;;  %v550_v48 = vpack.c.bf16 %v414_v37, %v406_v33 }
 0x1f1   : > { %v1771_v44 = vpop.f32.mrf.mxu3  ;;  %2404 = vst [vmem:[%s2986_s29 + $0x18] sm:$0xff] %v2340_v39   ;;  %v1595_v50 = vpop.f32.mrf.mxu1  ;;  %v1507_v53 = vadd.f32 %v1506_v3, %v2806_v7  ;;  %v1683_v55 = vadd.f32 %v1682_v13, %v1594_v52  ;;  %v544_v7 = vpack.c.bf16 %v400_v62, %v392_v61  ;;  %v407_v39 = vld [vmem:[%s2550_s13 + $0x728] sm:$0xff]  ;;  %v408_v13 = vld [vmem:[%s2550_s13 + $0x730] sm:$0xff]  ;;  %v409_v3 = vld [vmem:[%s2550_s13 + $0x738] sm:$0xff] }
 0x1f2   : > { %v551_v54 = vpack.c.bf16 %v415_v41, %v407_v39 }
 0x1f3   : > { %v1596_v0 = vadd.f32 %v1595_v50, %v1507_v53  ;;  %v1772_v9 = vadd.f32 %v1771_v44, %v1683_v55  ;;  %v416_v44 = vld [vmem:[%s2550_s13 + $0x770] sm:$0xff]  ;;  %v417_v50 = vld [vmem:[%s2550_s13 + $0x778] sm:$0xff] }
 0x1f4   : > { %v553_v62 = vpack.c.bf16 %v417_v50, %v409_v3 }
 0x1f5   : > { %v1839_v12 = vmax.f32 %v1772_v9, 0.0 }
 0x1f8   : > { %v1684_v47 = vpop.f32.mrf.mxu2  ;;  %v1509_v14 = vpop.f32.mrf.mxu0 }
 0x1f9   : > { %v1773_v1 = vpop.f32.mrf.mxu3  ;;  %v1685_v11 = vadd.f32 %v1684_v47, %v1596_v0  ;;  %v1598_v16 = vpop.f32.mrf.mxu1  ;;  %v1510_v22 = vadd.f32 %v1509_v14, %v2809_v17 }
 0x1fb   : > { %v1774_v23 = vadd.f32 %v1773_v1, %v1685_v11  ;;  %1548 = vmatmul.bf16.gmra.mxu0 %v542_v2  ;;  %v1599_v34 = vadd.f32 %v1598_v16, %v1510_v22  ;;  %v432_v22 = vld [vmem:[%s2550_s13 + $0x7f0] sm:$0xff] }
 0x1fc   : > { %1637 = vmatmul.bf16.gmra.mxu1 %v543_v6 }
 0x1fd   : > { %v1840_v24 = vmax.f32 %v1774_v23, 0.0  ;;  %1726 = vmatmul.bf16.gmra.mxu2 %v544_v7  ;;  %v422_v7 = vld [vmem:[%s2550_s13 + $0x7a0] sm:$0xff] }
 0x1fe   : > { %2254 = vmatmul.msk.bf16.gmra.mxu3 %vm1066_vm1, %v545_v19  ;;  %v430_v19 = vld [vmem:[%s2550_s13 + $0x7e0] sm:$0xff] }
 0x1ff   : > { %v2345_v25 = vpack.c.bf16 %v1840_v24, %v1839_v12  ;;  %v423_v12 = vld [vmem:[%s2550_s13 + $0x7a8] sm:$0xff] }
 0x200   : > { %v1687_v26 = vpop.f32.mrf.mxu2  ;;  %v1511_v31 = vpop.f32.mrf.mxu0  ;;  %v431_v24 = vld [vmem:[%s2550_s13 + $0x7e8] sm:$0xff] }
 0x201   : > { %v1776_v28 = vpop.f32.mrf.mxu3  ;;  %2405 = vst [vmem:[%s2986_s29 + $0x20] sm:$0xff] %v2345_v25   ;;  %v1600_v32 = vpop.f32.mrf.mxu1  ;;  %v1512_v45 = vadd.f32 %v1511_v31, %v2820_v40  ;;  %v1688_v38 = vadd.f32 %v1687_v26, %v1599_v34  ;;  %v552_v40 = vpack.c.bf16 %v416_v44, %v408_v13  ;;  %v424_v25 = vld [vmem:[%s2550_s13 + $0x7b0] sm:$0xff]  ;;  %v425_v26 = vld [vmem:[%s2550_s13 + $0x7b8] sm:$0xff]  ;;  %v558_v34 = vpack.c.bf16 %v430_v19, %v422_v7 }
 0x203   : > { %v1601_v52 = vadd.f32 %v1600_v32, %v1512_v45  ;;  %v1777_v55 = vadd.f32 %v1776_v28, %v1688_v38  ;;  %v433_v28 = vld [vmem:[%s2550_s13 + $0x7f8] sm:$0xff]  ;;  %v559_v45 = vpack.c.bf16 %v431_v24, %v423_v12 }
 0x204   : > { %v561_v41 = vpack.c.bf16 %v433_v28, %v425_v26 }
 0x205   : > { %v1841_v5 = vmax.f32 %v1777_v55, 0.0 }
 0x208   : > { %v1689_v17 = vpop.f32.mrf.mxu2  ;;  %v1514_v58 = vpop.f32.mrf.mxu0 }
 0x209   : > { %v1778_v53 = vpop.f32.mrf.mxu3  ;;  %v1690_v35 = vadd.f32 %v1689_v17, %v1601_v52  ;;  %v1603_v61 = vpop.f32.mrf.mxu1  ;;  %v1515_v1 = vadd.f32 %v1514_v58, %v2823_v51 }
 0x20b   : > { %v1779_v63 = vadd.f32 %v1778_v53, %v1690_v35  ;;  %1553 = vmatmul.bf16.gmra.mxu0 %v550_v48  ;;  %v1604_v14 = vadd.f32 %v1603_v61, %v1515_v1 }
 0x20c   : > { %1642 = vmatmul.bf16.gmra.mxu1 %v551_v54 }
 0x20d   : > { %v1842_v0 = vmax.f32 %v1779_v63, 0.0  ;;  %1731 = vmatmul.bf16.gmra.mxu2 %v552_v40 }
 0x20e   : > { %2255 = vmatmul.msk.bf16.gmra.mxu3 %vm1066_vm1, %v553_v62 }
 0x20f   : > { %v2350_v47 = vpack.c.bf16 %v1842_v0, %v1841_v5 }
 0x210   : > { %v1692_v2 = vpop.f32.mrf.mxu2  ;;  %v1516_v9 = vpop.f32.mrf.mxu0 }
 0x211   : > { %v1781_v6 = vpop.f32.mrf.mxu3  ;;  %2406 = vst [vmem:[%s2986_s29 + $0x28] sm:$0xff] %v2350_v47   ;;  %v1605_v11 = vpop.f32.mrf.mxu1  ;;  %v1517_v16 = vadd.f32 %v1516_v9, %v2834_v10  ;;  %v1693_v23 = vadd.f32 %v1692_v2, %v1604_v14  ;;  %v560_v10 = vpack.c.bf16 %v432_v22, %v424_v25 }
 0x213   : > { %v1606_v31 = vadd.f32 %v1605_v11, %v1517_v16  ;;  %v1782_v33 = vadd.f32 %v1781_v6, %v1693_v23 }
 0x215   : > { %v1843_v44 = vmax.f32 %v1782_v33, 0.0 }
 0x218   : > { %v1694_v51 = vpop.f32.mrf.mxu2  ;;  %v1519_v38 = vpop.f32.mrf.mxu0 }
 0x219   : > { %v1783_v32 = vpop.f32.mrf.mxu3  ;;  %v1695_v37 = vadd.f32 %v1694_v51, %v1606_v31  ;;  %v1608_v39 = vpop.f32.mrf.mxu1  ;;  %v1520_v52 = vadd.f32 %v1519_v38, %v2837_v21 }
 0x21b   : > { %v1784_v13 = vadd.f32 %v1783_v32, %v1695_v37  ;;  %1558 = vmatmul.bf16.gmra.mxu0 %v558_v34  ;;  %v1609_v55 = vadd.f32 %v1608_v39, %v1520_v52 }
 0x21c   : > { %1647 = vmatmul.bf16.gmra.mxu1 %v559_v45 }
 0x21d   : > { %v1844_v3 = vmax.f32 %v1784_v13, 0.0  ;;  %1736 = vmatmul.bf16.gmra.mxu2 %v560_v10 }
 0x21e   : > { %2256 = vmatmul.msk.bf16.gmra.mxu3 %vm1066_vm1, %v561_v41 }
 0x21f   : > { %v2355_v50 = vpack.c.bf16 %v1844_v3, %v1843_v44 }
 0x220   : > { %v1697_v17 = vpop.f32.mrf.mxu2  ;;  %v1521_v48 = vpop.f32.mrf.mxu0 }
 0x221   : > { %v1786_v53 = vpop.f32.mrf.mxu3  ;;  %2407 = vst [vmem:[%s2986_s29 + $0x30] sm:$0xff] %v2355_v50   ;;  %v1610_v54 = vpop.f32.mrf.mxu1  ;;  %v1522_v35 = vadd.f32 %v1521_v48, %v2848_v46  ;;  %v1698_v58 = vadd.f32 %v1697_v17, %v1609_v55 }
 0x223   : > { %v1611_v61 = vadd.f32 %v1610_v54, %v1522_v35  ;;  %v1787_v63 = vadd.f32 %v1786_v53, %v1698_v58 }
 0x225   : > { %v1845_v2 = vmax.f32 %v1787_v63, 0.0 }
 0x228   : > { %v1699_v40 = vpop.f32.mrf.mxu2  ;;  %v1524_v0 = vpop.f32.mrf.mxu0 }
 0x229   : > { %v1788_v62 = vpop.f32.mrf.mxu3  ;;  %v1700_v5 = vadd.f32 %v1699_v40, %v1611_v61  ;;  %v1613_v47 = vpop.f32.mrf.mxu1  ;;  %v1525_v9 = vadd.f32 %v1524_v0, %v2852_v57 }
 0x22b   : > { %v1789_v1 = vadd.f32 %v1788_v62, %v1700_v5  ;;  %v1614_v7 = vadd.f32 %v1613_v47, %v1525_v9 }
 0x22d   : > { %v1846_v21 = vmax.f32 %v1789_v1, 0.0 }
 0x22f   : > { %v2360_v6 = vpack.c.bf16 %v1846_v21, %v1845_v2 }
 0x230   : > { %v1702_v11 = vpop.f32.mrf.mxu2  ;;  %v1526_v16 = vpop.f32.mrf.mxu0 }
 0x231   : > { %v1791_v14 = vpop.f32.mrf.mxu3  ;;  %2408 = vst [vmem:[%s2986_s29 + $0x38] sm:$0xff] %v2360_v6   ;;  %v1615_v46 = vpop.f32.mrf.mxu1  ;;  %v1527_v19 = vadd.f32 %v1526_v16, %v2863_v20  ;;  %v1703_v23 = vadd.f32 %v1702_v11, %v1614_v7 }
 0x233   : > { %v1616_v12 = vadd.f32 %v1615_v46, %v1527_v19  ;;  %v1792_v22 = vadd.f32 %v1791_v14, %v1703_v23 }
 0x235   : > { %v1847_v32 = vmax.f32 %v1792_v22, 0.0 }
 0x238   : > { %v1704_v24 = vpop.f32.mrf.mxu2  ;;  %v1529_v28 = vpop.f32.mrf.mxu0 }
 0x239   : > { %v1793_v25 = vpop.f32.mrf.mxu3  ;;  %v1705_v26 = vadd.f32 %v1704_v24, %v1616_v12  ;;  %v1618_v31 = vpop.f32.mrf.mxu1  ;;  %v1530_v45 = vadd.f32 %v1529_v28, %v2867_v30 }
 0x23b   : > { %v1794_v51 = vadd.f32 %v1793_v25, %v1705_v26  ;;  %v1619_v39 = vadd.f32 %v1618_v31, %v1530_v45 }
 0x23d   : > { %v1848_v57 = vmax.f32 %v1794_v51, 0.0 }
 0x23f   : > { %v2365_v34 = vpack.c.bf16 %v1848_v57, %v1847_v32 }
 0x240   : > { %v1707_v33 = vpop.f32.mrf.mxu2  ;;  %v1531_v38 = vpop.f32.mrf.mxu0 }
 0x241   : > { %v1796_v37 = vpop.f32.mrf.mxu3  ;;  %2409 = vst [vmem:[%s2986_s29 + $0x40] sm:$0xff] %v2365_v34   ;;  %v1620_v20 = vpop.f32.mrf.mxu1  ;;  %v1532_v10 = vadd.f32 %v1531_v38, %v2878_v59  ;;  %v1708_v41 = vadd.f32 %v1707_v33, %v1619_v39 }
 0x243   : > { %v1621_v13 = vadd.f32 %v1620_v20, %v1532_v10  ;;  %v1797_v50 = vadd.f32 %v1796_v37, %v1708_v41 }
 0x245   : > { %v1849_v54 = vmax.f32 %v1797_v50, 0.0 }
 0x248   : > { %v1709_v44 = vpop.f32.mrf.mxu2  ;;  %v1534_v17 = vpop.f32.mrf.mxu0 }
 0x249   : > { %v1798_v3 = vpop.f32.mrf.mxu3  ;;  %v1710_v52 = vadd.f32 %v1709_v44, %v1621_v13  ;;  %v1623_v53 = vpop.f32.mrf.mxu1  ;;  %v1535_v35 = vadd.f32 %v1534_v17, %v2882_v4 }
 0x24b   : > { %v1799_v48 = vadd.f32 %v1798_v3, %v1710_v52  ;;  %v1624_v62 = vadd.f32 %v1623_v53, %v1535_v35 }
 0x24d   : > { %v1850_v30 = vmax.f32 %v1799_v48, 0.0 }
 0x24f   : > { %v2370_v55 = vpack.c.bf16 %v1850_v30, %v1849_v54 }
 0x250   : > { %v1712_v58 = vpop.f32.mrf.mxu2  ;;  %v1536_v40 = vpop.f32.mrf.mxu0 }
 0x251   : > { %v1801_v61 = vpop.f32.mrf.mxu3  ;;  %2410 = vst [vmem:[%s2986_s29 + $0x48] sm:$0xff] %v2370_v55   ;;  %v1625_v59 = vpop.f32.mrf.mxu1  ;;  %v1537_v63 = vadd.f32 %v1536_v40, %v2893_v36  ;;  %v1713_v5 = vadd.f32 %v1712_v58, %v1624_v62 }
 0x253   : > { %v1626_v0 = vadd.f32 %v1625_v59, %v1537_v63  ;;  %v1802_v2 = vadd.f32 %v1801_v61, %v1713_v5 }
 0x255   : > { %v1851_v14 = vmax.f32 %v1802_v2, 0.0 }
 0x258   : > { %v1714_v47 = vpop.f32.mrf.mxu2  ;;  %v1539_v6 = vpop.f32.mrf.mxu0 }
 0x259   : > { %v1803_v1 = vpop.f32.mrf.mxu3  ;;  %v1715_v21 = vadd.f32 %v1714_v47, %v1626_v0  ;;  %v1628_v9 = vpop.f32.mrf.mxu1  ;;  %v1540_v46 = vadd.f32 %v1539_v6, %v2897_v49 }
 0x25b   : > { %v1804_v11 = vadd.f32 %v1803_v1, %v1715_v21  ;;  %v1629_v12 = vadd.f32 %v1628_v9, %v1540_v46 }
 0x25d   : > { %v1852_v4 = vmax.f32 %v1804_v11, 0.0 }
 0x25f   : > { %v2375_v16 = vpack.c.bf16 %v1852_v4, %v1851_v14 }
 0x260   : > { %v1717_v7 = vpop.f32.mrf.mxu2  ;;  %v1541_v23 = vpop.f32.mrf.mxu0 }
 0x261   : > { %v1806_v19 = vpop.f32.mrf.mxu3  ;;  %2411 = vst [vmem:[%s2986_s29 + $0x50] sm:$0xff] %v2375_v16   ;;  %v1630_v36 = vpop.f32.mrf.mxu1  ;;  %v1542_v24 = vadd.f32 %v1541_v23, %v2908_v15  ;;  %v1718_v25 = vadd.f32 %v1717_v7, %v1629_v12 }
 0x263   : > { %v1631_v22 = vadd.f32 %v1630_v36, %v1542_v24  ;;  %v1807_v31 = vadd.f32 %v1806_v19, %v1718_v25 }
 0x265   : > { %v1853_v45 = vmax.f32 %v1807_v31, 0.0 }
 0x268   : > { %v1719_v26 = vpop.f32.mrf.mxu2  ;;  %v1544_v32 = vpop.f32.mrf.mxu0 }
 0x269   : > { %v1808_v28 = vpop.f32.mrf.mxu3  ;;  %v1720_v51 = vadd.f32 %v1719_v26, %v1631_v22  ;;  %v1633_v57 = vpop.f32.mrf.mxu1  ;;  %v1545_v37 = vadd.f32 %v1544_v32, %v2912_v27 }
 0x26b   : > { %v1809_v34 = vadd.f32 %v1808_v28, %v1720_v51  ;;  %v1634_v10 = vadd.f32 %v1633_v57, %v1545_v37 }
 0x26d   : > { %v1854_v49 = vmax.f32 %v1809_v34, 0.0 }
 0x26f   : > { %v2380_v33 = vpack.c.bf16 %v1854_v49, %v1853_v45 }
 0x270   : > { %v1722_v38 = vpop.f32.mrf.mxu2  ;;  %v1546_v39 = vpop.f32.mrf.mxu0 }
 0x271   : > { %v1811_v20 = vpop.f32.mrf.mxu3  ;;  %2412 = vst [vmem:[%s2986_s29 + $0x58] sm:$0xff] %v2380_v33   ;;  %v1635_v15 = vpop.f32.mrf.mxu1  ;;  %v1547_v41 = vadd.f32 %v1546_v39, %v2923_v60  ;;  %v1723_v13 = vadd.f32 %v1722_v38, %v1634_v10 }
 0x273   : > { %v1636_v44 = vadd.f32 %v1635_v15, %v1547_v41  ;;  %v1812_v52 = vadd.f32 %v1811_v20, %v1723_v13 }
 0x275   : > { %v1855_v30 = vmax.f32 %v1812_v52, 0.0 }
 0x278   : > { %v1724_v3 = vpop.f32.mrf.mxu2  ;;  %v1549_v53 = vpop.f32.mrf.mxu0 }
 0x279   : > { %v1813_v50 = vpop.f32.mrf.mxu3  ;;  %v1725_v17 = vadd.f32 %v1724_v3, %v1636_v44  ;;  %v1638_v48 = vpop.f32.mrf.mxu1  ;;  %v1550_v35 = vadd.f32 %v1549_v53, %v2927_v8 }
 0x27b   : > { %v1814_v54 = vadd.f32 %v1813_v50, %v1725_v17  ;;  %v1639_v59 = vadd.f32 %v1638_v48, %v1550_v35 }
 0x27d   : > { %v1856_v27 = vmax.f32 %v1814_v54, 0.0 }
 0x27f   : > { %v2385_v55 = vpack.c.bf16 %v1856_v27, %v1855_v30 }
 0x280   : > { %v1727_v58 = vpop.f32.mrf.mxu2  ;;  %v1551_v40 = vpop.f32.mrf.mxu0 }
 0x281   : > { %v1816_v61 = vpop.f32.mrf.mxu3  ;;  %2413 = vst [vmem:[%s2986_s29 + $0x60] sm:$0xff] %v2385_v55   ;;  %v1640_v60 = vpop.f32.mrf.mxu1  ;;  %v1552_v62 = vadd.f32 %v1551_v40, %v2938_v42  ;;  %v1728_v63 = vadd.f32 %v1727_v58, %v1639_v59 }
 0x283   : > { %v1641_v5 = vadd.f32 %v1640_v60, %v1552_v62  ;;  %v1817_v1 = vadd.f32 %v1816_v61, %v1728_v63 }
 0x285   : > { %v1857_v11 = vmax.f32 %v1817_v1, 0.0 }
 0x288   : > { %v1729_v0 = vpop.f32.mrf.mxu2  ;;  %v1554_v21 = vpop.f32.mrf.mxu0 }
 0x289   : > { %v1818_v47 = vpop.f32.mrf.mxu3  ;;  %v1730_v2 = vadd.f32 %v1729_v0, %v1641_v5  ;;  %v1643_v6 = vpop.f32.mrf.mxu1  ;;  %v1555_v4 = vadd.f32 %v1554_v21, %v2942_v56 }
 0x28b   : > { %v1819_v9 = vadd.f32 %v1818_v47, %v1730_v2  ;;  %v1644_v19 = vadd.f32 %v1643_v6, %v1555_v4 }
 0x28d   : > { %v1858_v8 = vmax.f32 %v1819_v9, 0.0 }
 0x28f   : > { %v2390_v14 = vpack.c.bf16 %v1858_v8, %v1857_v11 }
 0x290   : > { %v1732_v16 = vpop.f32.mrf.mxu2  ;;  %v1556_v7 = vpop.f32.mrf.mxu0 }
 0x291   : > { %v1821_v46 = vpop.f32.mrf.mxu3  ;;  %2414 = vst [vmem:[%s2986_s29 + $0x68] sm:$0xff] %v2390_v14   ;;  %v1645_v42 = vpop.f32.mrf.mxu1  ;;  %v1557_v23 = vadd.f32 %v1556_v7, %v2955_v29  ;;  %v1733_v36 = vadd.f32 %v1732_v16, %v1644_v19 }
 0x293   : > { %v1646_v12 = vadd.f32 %v1645_v42, %v1557_v23  ;;  %v1822_v22 = vadd.f32 %v1821_v46, %v1733_v36 }
 0x295   : > { %v1859_v32 = vmax.f32 %v1822_v22, 0.0 }
 0x298   : > { %v1734_v24 = vpop.f32.mrf.mxu2  ;;  %v1559_v28 = vpop.f32.mrf.mxu0 }
 0x299   : > { %v1823_v25 = vpop.f32.mrf.mxu3  ;;  %v1735_v26 = vadd.f32 %v1734_v24, %v1646_v12  ;;  %v1648_v51 = vpop.f32.mrf.mxu1  ;;  %v1560_v34 = vadd.f32 %v1559_v28, %v2958_v43 }
 0x29b   : > { %v1824_v31 = vadd.f32 %v1823_v25, %v1735_v26  ;;  %v1649_v33 = vadd.f32 %v1648_v51, %v1560_v34 }
 0x29d   : > { %v1860_v56 = vmax.f32 %v1824_v31, 0.0 }
 0x29f   : > { %v2395_v57 = vpack.c.bf16 %v1860_v56, %v1859_v32 }
 0x2a0   : > { %v1737_v45 = vpop.f32.mrf.mxu2  ;;  %v1561_v29 = vpop.f32.mrf.mxu0 }
 0x2a1   : > { %v1826_v49 = vpop.f32.mrf.mxu3  ;;  %2415 = vst [vmem:[%s2986_s29 + $0x70] sm:$0xff] %v2395_v57   ;;  %v1562_v37 = vadd.f32 %v1561_v29, %v2968_v18  ;;  %v1738_v38 = vadd.f32 %v1737_v45, %v1649_v33  ;;  %v1650_v20 = vpop.f32.mrf.mxu1 }
 0x2a3   : > { %v1651_v39 = vadd.f32 %v1650_v20, %v1562_v37  ;;  %v1827_v10 = vadd.f32 %v1826_v49, %v1738_v38 }
 0x2a5   : > { %v1861_v3 = vmax.f32 %v1827_v10, 0.0 }
 0x2a8   : > { %v1739_v15 = vpop.f32.mrf.mxu2 }
 0x2a9   : > { %v1740_v41 = vadd.f32 %v1739_v15, %v1651_v39  ;;  %v1828_v13 = vpop.f32.mrf.mxu3 }
 0x2ab   : > { %v1829_v44 = vadd.f32 %v1828_v13, %v1740_v41 }
 0x2ad   : > { %v1862_v50 = vmax.f32 %v1829_v44, 0.0 }
 0x2af   : > { %v2400_v52 = vpack.c.bf16 %v1862_v50, %v1861_v3 }
 0x2b1   : > { %2416 = vst [vmem:[%s2986_s29 + $0x78] sm:$0xff] %v2400_v52  }
 0x2b2 PF: > { %s13_s12 = sadd.s32 1, %s2433_s12  }
 0x2b3   : > { %p10_p4 = scmp.ge.s32.totalorder %s13_s12, 4  }
 0x2b5   :  { %12 = sbr.rel (!%p10_p4) target bundleno = 1 (0x1), region = 62 }

</bundles_post_ra>
